<compile_context>
chip_gen: v7x
topology: tpu7x:2x2x1
jax: 0.10.0
libtpu: 0.0.40
codegen_flags: <defaults>
</compile_context>

<pallas_src>
import jax
import jax.numpy as jnp
from jax.experimental import pallas as pl
from jax.experimental.pallas import tpu as pltpu

_EPS = 1e-5


def _halo(W):
    # Left halo width for the flat line buffer, rounded so the interior store is
    # 128-lane aligned.
    return ((W + 1 + 127) // 128) * 128


# ----------------------------- Pallas kernel ------------------------------- #
def _make_kernel(Bt, H, W, Cmid, Cout, has_x):
    N = H * W
    PAD_L = _halo(W)

    def kernel(*refs):
        if has_x:
            (enc_ref, x_ref, down_ref, wg_e_ref, wg_x_ref, bg_ref,
             wh_ref, bh_ref, wf_ref, bf_ref, sel_ref, out_ref, line_ref) = refs
        else:
            (enc_ref, down_ref, wg_e_ref, bg_ref,
             wh_ref, bh_ref, wf_ref, bf_ref, sel_ref, out_ref, line_ref) = refs
            x_ref, wg_x_ref = None, None

        # ---- per-grid-step constants, hoisted out of the image loop ----
        wg_e = wg_e_ref[...]
        wg_x = wg_x_ref[...] if has_x else None
        wh = wh_ref[...]
        bgb = jnp.broadcast_to(bg_ref[...], (Cmid, N))
        bhb = jnp.broadcast_to(bh_ref[...], (Cmid, N))
        bfb = jnp.broadcast_to(bf_ref[...], (Cout, N))

        # Column masks for the 3x3 taps: zero pixels whose left/right neighbour
        # wrapped across a row boundary in the flat pixel axis.
        col = jax.lax.broadcasted_iota(jnp.int32, (Cmid, N), 1) % W
        mask_l = jnp.where(col != 0, 1.0, 0.0).astype(jnp.float32)        # ox = -1
        mask_r = jnp.where(col != (W - 1), 1.0, 0.0).astype(jnp.float32)  # ox = +1

        # Re-zero only the halo strips (2 aligned vreg stores); the interior is
        # fully rewritten per image.  No persistent-scratch / megacore hazards.
        line_ref[:, 0:PAD_L] = jnp.zeros((Cmid, PAD_L), jnp.float32)
        line_ref[:, PAD_L + N:PAD_L + N + PAD_L] = jnp.zeros((Cmid, PAD_L), jnp.float32)

        for b in range(Bt):                                   # Bt images per grid step
            # ---- att_layer_g: 1x1 conv (BN folded, concat done via split weights) + ReLU
            g = jnp.dot(wg_e, enc_ref[b], preferred_element_type=jnp.float32)
            if has_x:
                g = g + jnp.dot(wg_x, x_ref[b], preferred_element_type=jnp.float32)
            g = jnp.maximum(g + bgb, 0.0)                     # (Cmid, N)

            # ---- att_layer_h: 1x1 conv (BN folded) + Sigmoid ----
            h = jax.nn.sigmoid(jnp.dot(wh, g, preferred_element_type=jnp.float32) + bhb)

            # ---- attention gating: p = h * down_layer ----
            p = h * down_ref[b]                               # (Cmid, N)

            # ---- att_layer_f: 3x3 conv (padding=1), BN + bias folded ----
            # Nine accumulating dots over lane-shifted taps of the flat line buffer.
            line_ref[:, PAD_L:PAD_L + N] = p
            acc = bfb
            t = 0
            for dy in range(3):
                for dx in range(3):
                    s = PAD_L + (dy - 1) * W + (dx - 1)
                    tap = line_ref[:, s:s + N]                # p shifted by (dy-1, dx-1)
                    if dx == 0:
                        tap = tap * mask_l
                    elif dx == 2:
                        tap = tap * mask_r
                    acc = acc + jnp.dot(wf_ref[t], tap,
                                        preferred_element_type=jnp.float32)
                    t += 1
            f = jnp.maximum(acc, 0.0)                         # (Cout, N)

            # ---- MaxPool2d(2, 2): 4 selection matmuls + elementwise max ----
            pooled = jnp.dot(f, sel_ref[0], preferred_element_type=jnp.float32)
            for k in range(1, 4):
                pooled = jnp.maximum(
                    pooled, jnp.dot(f, sel_ref[k], preferred_element_type=jnp.float32))
            out_ref[b] = pooled.astype(out_ref.dtype)         # (Cout, Ho*Wo)

    return kernel


# ------------------------------- wrapper ------------------------------------ #
def _fold_bn(bn):
    gamma, beta, mean, var = bn
    scale = (gamma / jnp.sqrt(var + _EPS)).astype(jnp.float32)
    bias = (beta - mean * scale).astype(jnp.float32)
    return scale, bias


def _pick_block_batch(B, cap=4):
    # Largest divisor of B (capped for vreg pressure) that still leaves >= 2 grid
    # steps for software pipelining; fall back to the whole batch.
    best = None
    for d in range(1, min(B, cap) + 1):
        if B % d == 0 and B // d >= 2:
            best = d
    return best if best is not None else B


def att_enc_block(params, enc_layer, down_layer, x=None, *, block_batch=None,
                  vmem_limit_bytes=48 * 1024 * 1024):
    """Forward pass of AttEncBlock. Inputs/outputs use PyTorch NCHW convention."""
    B, Cenc, H, W = enc_layer.shape
    Cmid = down_layer.shape[1]
    Cout = params['conv_f_w'].shape[0]
    assert H % 2 == 0 and W % 2 == 0, "MaxPool2d(2,2) requires even H and W"
    N = H * W
    Ho, Wo = H // 2, W // 2
    Npool = Ho * Wo

    has_x = x is not None

    # ---- fold BatchNorm (inference mode) and the conv_f bias into the weights ----
    sg, bg = _fold_bn(params['bn_g'])
    sh, bh = _fold_bn(params['bn_h'])
    sf, bf_bn = _fold_bn(params['bn_f'])

    wg = (params['conv_g_w'][:, :, 0, 0] * sg[:, None]).astype(jnp.float32)   # (Cmid, Cin)
    wg_enc = wg[:, :Cenc]
    wh = (params['conv_h_w'][:, :, 0, 0] * sh[:, None]).astype(jnp.float32)   # (Cmid, Cmid)
    wf = jnp.transpose(params['conv_f_w'], (2, 3, 0, 1)).reshape(9, Cout, Cmid)
    wf = (wf * sf[None, :, None]).astype(jnp.float32)                          # (9, Cout, Cmid)
    bg = bg[:, None]
    bh = bh[:, None]
    bf = (params['conv_f_b'] * sf + bf_bn).astype(jnp.float32)[:, None]        # (Cout, 1)

    # ---- 2x2 max-pool selection matrices: lane compaction done on the MXU ----
    j = jnp.arange(Npool)
    base = 2 * (j // Wo) * W + 2 * (j % Wo)
    offs = jnp.array([0, 1, W, W + 1], jnp.int32)
    sel = (jnp.arange(N)[None, :, None]
           == (base[None, :] + offs[:, None])[:, None, :]).astype(jnp.float32)  # (4, N, Npool)

    # ---- inputs stay NCHW; merging (H, W) is a contiguous reshape (bitcast) ----
    enc_r = jnp.reshape(enc_layer, (B, Cenc, N)).astype(jnp.float32)
    down_r = jnp.reshape(down_layer, (B, Cmid, N)).astype(jnp.float32)
    if has_x:
        Cextra = x.shape[1]
        x_r = jnp.reshape(x, (B, Cextra, N)).astype(jnp.float32)
        wg_x = wg[:, Cenc:]

    Bt = block_batch if block_batch is not None else _pick_block_batch(B)
    assert B % Bt == 0

    def _blk(c):
        return pl.BlockSpec((Bt, c, N), lambda i: (i, 0, 0))

    def _rep(arr):
        return pl.BlockSpec(arr.shape, lambda i, _z=(0,) * arr.ndim: _z)

    operands = [enc_r]
    in_specs = [_blk(Cenc)]
    if has_x:
        operands.append(x_r)
        in_specs.append(_blk(Cextra))
    operands.append(down_r)
    in_specs.append(_blk(Cmid))
    operands.append(wg_enc)
    in_specs.append(_rep(wg_enc))
    if has_x:
        operands.append(wg_x)
        in_specs.append(_rep(wg_x))
    operands += [bg, wh, bh, wf, bf, sel]
    in_specs += [_rep(bg), _rep(wh), _rep(bh), _rep(wf), _rep(bf), _rep(sel)]

    kernel = _make_kernel(Bt, H, W, Cmid, Cout, has_x)
    pad_l = _halo(W)

    out = pl.pallas_call(
        kernel,
        out_shape=jax.ShapeDtypeStruct((B, Cout, Npool), jnp.float32),
        grid=(B // Bt,),
        in_specs=in_specs,
        out_specs=pl.BlockSpec((Bt, Cout, Npool), lambda i: (i, 0, 0)),
        scratch_shapes=[
            pltpu.VMEM((Cmid, N + 2 * pad_l), jnp.float32),   # flat 3x3 line buffer
        ],
        compiler_params=pltpu.CompilerParams(
            dimension_semantics=("parallel",),
            vmem_limit_bytes=vmem_limit_bytes),
    )(*operands)

    # (B, Cout, Ho*Wo) -> (B, Cout, Ho, Wo): contiguous split of the last dim.
    return out.reshape(B, Cout, Ho, Wo)


# ------------------------ deterministic parameter init ---------------------- #
def init_params(key, in_channels, mid_channels, out_channels):
    ks = jax.random.split(key, 16)

    def bn(k0, k1, k2, k3, c):
        gamma = 1.0 + 0.1 * jax.random.normal(k0, (c,), jnp.float32)
        beta = 0.1 * jax.random.normal(k1, (c,), jnp.float32)
        mean = 0.1 * jax.random.normal(k2, (c,), jnp.float32)
        var = 0.5 + jax.random.uniform(k3, (c,), jnp.float32)
        return (gamma, beta, mean, var)

    return {
        'conv_g_w': 0.3 * jax.random.normal(ks[0], (mid_channels, in_channels, 1, 1), jnp.float32),
        'bn_g': bn(ks[1], ks[2], ks[3], ks[4], mid_channels),
        'conv_h_w': 0.3 * jax.random.normal(ks[5], (mid_channels, mid_channels, 1, 1), jnp.float32),
        'bn_h': bn(ks[6], ks[7], ks[8], ks[9], mid_channels),
        'conv_f_w': 0.1 * jax.random.normal(ks[10], (out_channels, mid_channels, 3, 3), jnp.float32),
        'conv_f_b': 0.05 * jax.random.normal(ks[11], (out_channels,), jnp.float32),
        'bn_f': bn(ks[12], ks[13], ks[14], ks[15], out_channels),
    }


# --------------------------- pure-JAX reference ----------------------------- #
def reference(params, enc_layer, down_layer, x=None):
    logits = enc_layer if x is None else jnp.concatenate([enc_layer, x], axis=1)

    def conv(v, w, padding):
        return jax.lax.conv_general_dilated(
            v, w, window_strides=(1, 1), padding=padding,
            dimension_numbers=('NCHW', 'OIHW', 'NCHW'))

    def bn(v, p):
        gamma, beta, mean, var = p
        inv = gamma / jnp.sqrt(var + _EPS)
        return (v - mean[None, :, None, None]) * inv[None, :, None, None] \
            + beta[None, :, None, None]

    g = jax.nn.relu(bn(conv(logits, params['conv_g_w'], 'VALID'), params['bn_g']))
    h = jax.nn.sigmoid(bn(conv(g, params['conv_h_w'], 'VALID'), params['bn_h']))
    p = h * down_layer
    f = conv(p, params['conv_f_w'], 'SAME') + params['conv_f_b'][None, :, None, None]
    f = jax.nn.relu(bn(f, params['bn_f']))
    return jax.lax.reduce_window(f, -jnp.inf, jax.lax.max,
                                 (1, 1, 2, 2), (1, 1, 2, 2), 'VALID')


if __name__ == "__main__":
    B, H, W = 4, 16, 16
    enc_ch, extra_ch = 4, 4
    in_channels = enc_ch + extra_ch        # concat([enc_layer, x], dim=1)
    mid_channels, out_channels = 8, 16

    key = jax.random.PRNGKey(0)
    k_enc, k_x, k_down, k_params = jax.random.split(key, 4)
    enc_layer = jax.random.normal(k_enc, (B, enc_ch, H, W), jnp.float32)
    x_extra = jax.random.normal(k_x, (B, extra_ch, H, W), jnp.float32)
    down_layer = jax.random.normal(k_down, (B, mid_channels, H, W), jnp.float32)
    params = init_params(k_params, in_channels, mid_channels, out_channels)

    out = att_enc_block(params, enc_layer, down_layer, x=x_extra)
    out = jax.block_until_ready(out)

    ref = reference(params, enc_layer, down_layer, x=x_extra)
    assert out.shape == (B, out_channels, H // 2, W // 2), out.shape
    assert bool(jnp.all(jnp.isfinite(out)))
    assert bool(jnp.allclose(out, ref, rtol=1e-4, atol=1e-4)), \
        float(jnp.max(jnp.abs(out - ref)))
    print("KERNEL_OK")
</pallas_src>

<mosaic_0001>
module attributes {stable_mosaic.version = 11 : i64} {
  func.func @kernel(%arg0: i32, %arg1: memref<2x4x256xf32, #tpu.memory_space<vmem>>, %arg2: memref<2x4x256xf32, #tpu.memory_space<vmem>>, %arg3: memref<2x8x256xf32, #tpu.memory_space<vmem>>, %arg4: memref<8x4xf32, #tpu.memory_space<vmem>>, %arg5: memref<8x4xf32, #tpu.memory_space<vmem>>, %arg6: memref<8x1xf32, #tpu.memory_space<vmem>>, %arg7: memref<8x8xf32, #tpu.memory_space<vmem>>, %arg8: memref<8x1xf32, #tpu.memory_space<vmem>>, %arg9: memref<9x16x8xf32, #tpu.memory_space<vmem>>, %arg10: memref<16x1xf32, #tpu.memory_space<vmem>>, %arg11: memref<4x256x64xf32, #tpu.memory_space<vmem>>, %arg12: memref<2x16x64xf32, #tpu.memory_space<vmem>>, %arg13: memref<8x512xf32, #tpu.memory_space<vmem>>) attributes {dimension_semantics = [#tpu.dimension_semantics<parallel>], iteration_bounds = array<i64: 2>, scalar_prefetch = 0 : i64, scratch_operands = 1 : i64, tpu.core_type = #tpu.core_type<tc>, window_params = [{transform_indices = @transform_0, window_bounds = array<i64: 2, 4, 256>}, {transform_indices = @transform_1, window_bounds = array<i64: 2, 4, 256>}, {transform_indices = @transform_2, window_bounds = array<i64: 2, 8, 256>}, {pipeline_mode = #tpu.pipeline_mode<synchronous>, transform_indices = @transform_3, window_bounds = array<i64: 8, 4>}, {pipeline_mode = #tpu.pipeline_mode<synchronous>, transform_indices = @transform_4, window_bounds = array<i64: 8, 4>}, {pipeline_mode = #tpu.pipeline_mode<synchronous>, transform_indices = @transform_5, window_bounds = array<i64: 8, 1>}, {pipeline_mode = #tpu.pipeline_mode<synchronous>, transform_indices = @transform_6, window_bounds = array<i64: 8, 8>}, {pipeline_mode = #tpu.pipeline_mode<synchronous>, transform_indices = @transform_7, window_bounds = array<i64: 8, 1>}, {pipeline_mode = #tpu.pipeline_mode<synchronous>, transform_indices = @transform_8, window_bounds = array<i64: 9, 16, 8>}, {pipeline_mode = #tpu.pipeline_mode<synchronous>, transform_indices = @transform_9, window_bounds = array<i64: 16, 1>}, {pipeline_mode = #tpu.pipeline_mode<synchronous>, transform_indices = @transform_10, window_bounds = array<i64: 4, 256, 64>}, {transform_indices = @transform_11, window_bounds = array<i64: 2, 16, 64>}]} {
    %c0 = arith.constant 0 : index
    %c0_0 = arith.constant 0 : index
    %0 = vector.load %arg4[%c0, %c0_0] : memref<8x4xf32, #tpu.memory_space<vmem>>, vector<8x4xf32>
    %c0_1 = arith.constant 0 : index
    %c0_2 = arith.constant 0 : index
    %1 = vector.load %arg5[%c0_1, %c0_2] : memref<8x4xf32, #tpu.memory_space<vmem>>, vector<8x4xf32>
    %c0_3 = arith.constant 0 : index
    %c0_4 = arith.constant 0 : index
    %2 = vector.load %arg7[%c0_3, %c0_4] : memref<8x8xf32, #tpu.memory_space<vmem>>, vector<8x8xf32>
    %c0_5 = arith.constant 0 : index
    %c0_6 = arith.constant 0 : index
    %3 = vector.load %arg6[%c0_5, %c0_6] : memref<8x1xf32, #tpu.memory_space<vmem>>, vector<8x1xf32>
    %4 = vector.shape_cast %3 : vector<8x1xf32> to vector<8x1xf32>
    %5 = vector.broadcast %4 : vector<8x1xf32> to vector<8x256xf32>
    %c0_7 = arith.constant 0 : index
    %c0_8 = arith.constant 0 : index
    %6 = vector.load %arg8[%c0_7, %c0_8] : memref<8x1xf32, #tpu.memory_space<vmem>>, vector<8x1xf32>
    %7 = vector.shape_cast %6 : vector<8x1xf32> to vector<8x1xf32>
    %8 = vector.broadcast %7 : vector<8x1xf32> to vector<8x256xf32>
    %c0_9 = arith.constant 0 : index
    %c0_10 = arith.constant 0 : index
    %9 = vector.load %arg10[%c0_9, %c0_10] : memref<16x1xf32, #tpu.memory_space<vmem>>, vector<16x1xf32>
    %10 = vector.shape_cast %9 : vector<16x1xf32> to vector<16x1xf32>
    %11 = vector.broadcast %10 : vector<16x1xf32> to vector<16x256xf32>
    %12 = tpu.iota {dimensions = array<i32: 1>} : vector<8x256xi32>
    %c16_i32 = arith.constant 16 : i32
    %c0_i32 = arith.constant 0 : i32
    %13 = arith.cmpi eq, %c16_i32, %c0_i32 : i32
    %c1_i32 = arith.constant 1 : i32
    %14 = arith.select %13, %c1_i32, %c16_i32 : i32
    %15 = vector.broadcast %14 : i32 to vector<8x256xi32>
    %16 = arith.remsi %12, %15 : vector<8x256xi32>
    %c0_i32_11 = arith.constant 0 : i32
    %17 = vector.broadcast %c0_i32_11 : i32 to vector<8x256xi32>
    %18 = arith.cmpi ne, %16, %17 : vector<8x256xi32>
    %c0_i32_12 = arith.constant 0 : i32
    %19 = vector.broadcast %c0_i32_12 : i32 to vector<8x256xi32>
    %20 = arith.cmpi slt, %16, %19 : vector<8x256xi32>
    %c0_i32_13 = arith.constant 0 : i32
    %21 = arith.cmpi slt, %14, %c0_i32_13 : i32
    %22 = vector.broadcast %21 : i1 to vector<8x256xi1>
    %23 = vector.broadcast %22 : vector<8x256xi1> to vector<8x256xi1>
    %24 = arith.xori %20, %23 : vector<8x256xi1>
    %25 = arith.andi %24, %18 : vector<8x256xi1>
    %26 = vector.broadcast %14 : i32 to vector<8x256xi32>
    %27 = arith.addi %16, %26 : vector<8x256xi32>
    %28 = arith.select %25, %27, %16 : vector<8x256xi1>, vector<8x256xi32>
    %c0_i32_14 = arith.constant 0 : i32
    %29 = vector.broadcast %c0_i32_14 : i32 to vector<8x256xi32>
    %30 = arith.cmpi ne, %28, %29 : vector<8x256xi32>
    %cst = arith.constant 1.000000e+00 : f32
    %cst_15 = arith.constant 0.000000e+00 : f32
    %31 = vector.broadcast %cst : f32 to vector<8x256xf32>
    %32 = vector.broadcast %cst_15 : f32 to vector<8x256xf32>
    %33 = arith.select %30, %31, %32 : vector<8x256xi1>, vector<8x256xf32>
    %c15_i32 = arith.constant 15 : i32
    %34 = vector.broadcast %c15_i32 : i32 to vector<8x256xi32>
    %35 = arith.cmpi ne, %28, %34 : vector<8x256xi32>
    %cst_16 = arith.constant 1.000000e+00 : f32
    %cst_17 = arith.constant 0.000000e+00 : f32
    %36 = vector.broadcast %cst_16 : f32 to vector<8x256xf32>
    %37 = vector.broadcast %cst_17 : f32 to vector<8x256xf32>
    %38 = arith.select %35, %36, %37 : vector<8x256xi1>, vector<8x256xf32>
    %cst_18 = arith.constant 0.000000e+00 : f32
    %39 = vector.broadcast %cst_18 : f32 to vector<8x128xf32>
    %c0_19 = arith.constant 0 : index
    %c0_20 = arith.constant 0 : index
    %40 = vector.load %arg13[%c0_19, %c0_20] : memref<8x512xf32, #tpu.memory_space<vmem>>, vector<8x128xf32>
    tpu.vector_store %arg13[%c0_19, %c0_20], %39 {strides = array<i32>} : memref<8x512xf32, #tpu.memory_space<vmem>>, vector<8x128xf32>,
    %cst_21 = arith.constant 0.000000e+00 : f32
    %41 = vector.broadcast %cst_21 : f32 to vector<8x128xf32>
    %c0_22 = arith.constant 0 : index
    %c384 = arith.constant 384 : index
    %42 = vector.load %arg13[%c0_22, %c384] : memref<8x512xf32, #tpu.memory_space<vmem>>, vector<8x128xf32>
    tpu.vector_store %arg13[%c0_22, %c384], %41 {strides = array<i32>} : memref<8x512xf32, #tpu.memory_space<vmem>>, vector<8x128xf32>,
    %c0_23 = arith.constant 0 : index
    %c0_24 = arith.constant 0 : index
    %c0_25 = arith.constant 0 : index
    %43 = vector.load %arg1[%c0_23, %c0_24, %c0_25] : memref<2x4x256xf32, #tpu.memory_space<vmem>>, vector<1x4x256xf32>
    %44 = vector.shape_cast %43 : vector<1x4x256xf32> to vector<4x256xf32>
    %cst_26 = arith.constant dense<0.000000e+00> : vector<8x256xf32>
    %45 = tpu.matmul %0, %44, %cst_26 {dimension_numbers = #tpu.dot_dimension_numbers<[1], [0], [0], [1], [0, 0, 1, 1], [], []>} : vector<8x4xf32>, vector<4x256xf32>, vector<8x256xf32> -> vector<8x256xf32>
    %c0_27 = arith.constant 0 : index
    %c0_28 = arith.constant 0 : index
    %c0_29 = arith.constant 0 : index
    %46 = vector.load %arg2[%c0_27, %c0_28, %c0_29] : memref<2x4x256xf32, #tpu.memory_space<vmem>>, vector<1x4x256xf32>
    %47 = vector.shape_cast %46 : vector<1x4x256xf32> to vector<4x256xf32>
    %cst_30 = arith.constant dense<0.000000e+00> : vector<8x256xf32>
    %48 = tpu.matmul %1, %47, %cst_30 {dimension_numbers = #tpu.dot_dimension_numbers<[1], [0], [0], [1], [0, 0, 1, 1], [], []>} : vector<8x4xf32>, vector<4x256xf32>, vector<8x256xf32> -> vector<8x256xf32>
    %49 = arith.addf %45, %48 : vector<8x256xf32>
    %50 = arith.addf %49, %5 : vector<8x256xf32>
    %cst_31 = arith.constant 0.000000e+00 : f32
    %51 = vector.broadcast %cst_31 : f32 to vector<8x256xf32>
    %52 = arith.maximumf %50, %51 : vector<8x256xf32>
    %cst_32 = arith.constant dense<0.000000e+00> : vector<8x256xf32>
    %53 = tpu.matmul %2, %52, %cst_32 {dimension_numbers = #tpu.dot_dimension_numbers<[1], [0], [0], [1], [0, 0, 1, 1], [], []>} : vector<8x8xf32>, vector<8x256xf32>, vector<8x256xf32> -> vector<8x256xf32>
    %54 = arith.addf %53, %8 : vector<8x256xf32>
    %55 = arith.negf %54 : vector<8x256xf32>
    %56 = math.exp %55 : vector<8x256xf32>
    %cst_33 = arith.constant 1.000000e+00 : f32
    %57 = vector.broadcast %cst_33 : f32 to vector<8x256xf32>
    %58 = arith.addf %57, %56 : vector<8x256xf32>
    %59 = arith.divf %57, %58 : vector<8x256xf32>
    %c0_34 = arith.constant 0 : index
    %c0_35 = arith.constant 0 : index
    %c0_36 = arith.constant 0 : index
    %60 = vector.load %arg3[%c0_34, %c0_35, %c0_36] : memref<2x8x256xf32, #tpu.memory_space<vmem>>, vector<1x8x256xf32>
    %61 = vector.shape_cast %60 : vector<1x8x256xf32> to vector<8x256xf32>
    %62 = arith.mulf %59, %61 : vector<8x256xf32>
    %c0_37 = arith.constant 0 : index
    %c128 = arith.constant 128 : index
    %63 = vector.load %arg13[%c0_37, %c128] : memref<8x512xf32, #tpu.memory_space<vmem>>, vector<8x256xf32>
    tpu.vector_store %arg13[%c0_37, %c128], %62 {strides = array<i32>} : memref<8x512xf32, #tpu.memory_space<vmem>>, vector<8x256xf32>,
    %c0_38 = arith.constant 0 : index
    %c111 = arith.constant 111 : index
    %64 = vector.load %arg13[%c0_38, %c111] : memref<8x512xf32, #tpu.memory_space<vmem>>, vector<8x256xf32>
    %65 = arith.mulf %64, %33 : vector<8x256xf32>
    %c0_39 = arith.constant 0 : index
    %c0_40 = arith.constant 0 : index
    %c0_41 = arith.constant 0 : index
    %66 = vector.load %arg9[%c0_39, %c0_40, %c0_41] : memref<9x16x8xf32, #tpu.memory_space<vmem>>, vector<1x16x8xf32>
    %67 = vector.shape_cast %66 : vector<1x16x8xf32> to vector<16x8xf32>
    %cst_42 = arith.constant dense<0.000000e+00> : vector<16x256xf32>
    %68 = tpu.matmul %67, %65, %cst_42 {dimension_numbers = #tpu.dot_dimension_numbers<[1], [0], [0], [1], [0, 0, 1, 1], [], []>} : vector<16x8xf32>, vector<8x256xf32>, vector<16x256xf32> -> vector<16x256xf32>
    %69 = arith.addf %11, %68 : vector<16x256xf32>
    %c0_43 = arith.constant 0 : index
    %c112 = arith.constant 112 : index
    %70 = vector.load %arg13[%c0_43, %c112] : memref<8x512xf32, #tpu.memory_space<vmem>>, vector<8x256xf32>
    %c1 = arith.constant 1 : index
    %c0_44 = arith.constant 0 : index
    %c0_45 = arith.constant 0 : index
    %71 = vector.load %arg9[%c1, %c0_44, %c0_45] : memref<9x16x8xf32, #tpu.memory_space<vmem>>, vector<1x16x8xf32>
    %72 = vector.shape_cast %71 : vector<1x16x8xf32> to vector<16x8xf32>
    %cst_46 = arith.constant dense<0.000000e+00> : vector<16x256xf32>
    %73 = tpu.matmul %72, %70, %cst_46 {dimension_numbers = #tpu.dot_dimension_numbers<[1], [0], [0], [1], [0, 0, 1, 1], [], []>} : vector<16x8xf32>, vector<8x256xf32>, vector<16x256xf32> -> vector<16x256xf32>
    %74 = arith.addf %69, %73 : vector<16x256xf32>
    %c0_47 = arith.constant 0 : index
    %c113 = arith.constant 113 : index
    %75 = vector.load %arg13[%c0_47, %c113] : memref<8x512xf32, #tpu.memory_space<vmem>>, vector<8x256xf32>
    %76 = arith.mulf %75, %38 : vector<8x256xf32>
    %c2 = arith.constant 2 : index
    %c0_48 = arith.constant 0 : index
    %c0_49 = arith.constant 0 : index
    %77 = vector.load %arg9[%c2, %c0_48, %c0_49] : memref<9x16x8xf32, #tpu.memory_space<vmem>>, vector<1x16x8xf32>
    %78 = vector.shape_cast %77 : vector<1x16x8xf32> to vector<16x8xf32>
    %cst_50 = arith.constant dense<0.000000e+00> : vector<16x256xf32>
    %79 = tpu.matmul %78, %76, %cst_50 {dimension_numbers = #tpu.dot_dimension_numbers<[1], [0], [0], [1], [0, 0, 1, 1], [], []>} : vector<16x8xf32>, vector<8x256xf32>, vector<16x256xf32> -> vector<16x256xf32>
    %80 = arith.addf %74, %79 : vector<16x256xf32>
    %c0_51 = arith.constant 0 : index
    %c127 = arith.constant 127 : index
    %81 = vector.load %arg13[%c0_51, %c127] : memref<8x512xf32, #tpu.memory_space<vmem>>, vector<8x256xf32>
    %82 = arith.mulf %81, %33 : vector<8x256xf32>
    %c3 = arith.constant 3 : index
    %c0_52 = arith.constant 0 : index
    %c0_53 = arith.constant 0 : index
    %83 = vector.load %arg9[%c3, %c0_52, %c0_53] : memref<9x16x8xf32, #tpu.memory_space<vmem>>, vector<1x16x8xf32>
    %84 = vector.shape_cast %83 : vector<1x16x8xf32> to vector<16x8xf32>
    %cst_54 = arith.constant dense<0.000000e+00> : vector<16x256xf32>
    %85 = tpu.matmul %84, %82, %cst_54 {dimension_numbers = #tpu.dot_dimension_numbers<[1], [0], [0], [1], [0, 0, 1, 1], [], []>} : vector<16x8xf32>, vector<8x256xf32>, vector<16x256xf32> -> vector<16x256xf32>
    %86 = arith.addf %80, %85 : vector<16x256xf32>
    %c0_55 = arith.constant 0 : index
    %c128_56 = arith.constant 128 : index
    %87 = vector.load %arg13[%c0_55, %c128_56] : memref<8x512xf32, #tpu.memory_space<vmem>>, vector<8x256xf32>
    %c4 = arith.constant 4 : index
    %c0_57 = arith.constant 0 : index
    %c0_58 = arith.constant 0 : index
    %88 = vector.load %arg9[%c4, %c0_57, %c0_58] : memref<9x16x8xf32, #tpu.memory_space<vmem>>, vector<1x16x8xf32>
    %89 = vector.shape_cast %88 : vector<1x16x8xf32> to vector<16x8xf32>
    %cst_59 = arith.constant dense<0.000000e+00> : vector<16x256xf32>
    %90 = tpu.matmul %89, %87, %cst_59 {dimension_numbers = #tpu.dot_dimension_numbers<[1], [0], [0], [1], [0, 0, 1, 1], [], []>} : vector<16x8xf32>, vector<8x256xf32>, vector<16x256xf32> -> vector<16x256xf32>
    %91 = arith.addf %86, %90 : vector<16x256xf32>
    %c0_60 = arith.constant 0 : index
    %c129 = arith.constant 129 : index
    %92 = vector.load %arg13[%c0_60, %c129] : memref<8x512xf32, #tpu.memory_space<vmem>>, vector<8x256xf32>
    %93 = arith.mulf %92, %38 : vector<8x256xf32>
    %c5 = arith.constant 5 : index
    %c0_61 = arith.constant 0 : index
    %c0_62 = arith.constant 0 : index
    %94 = vector.load %arg9[%c5, %c0_61, %c0_62] : memref<9x16x8xf32, #tpu.memory_space<vmem>>, vector<1x16x8xf32>
    %95 = vector.shape_cast %94 : vector<1x16x8xf32> to vector<16x8xf32>
    %cst_63 = arith.constant dense<0.000000e+00> : vector<16x256xf32>
    %96 = tpu.matmul %95, %93, %cst_63 {dimension_numbers = #tpu.dot_dimension_numbers<[1], [0], [0], [1], [0, 0, 1, 1], [], []>} : vector<16x8xf32>, vector<8x256xf32>, vector<16x256xf32> -> vector<16x256xf32>
    %97 = arith.addf %91, %96 : vector<16x256xf32>
    %c0_64 = arith.constant 0 : index
    %c143 = arith.constant 143 : index
    %98 = vector.load %arg13[%c0_64, %c143] : memref<8x512xf32, #tpu.memory_space<vmem>>, vector<8x256xf32>
    %99 = arith.mulf %98, %33 : vector<8x256xf32>
    %c6 = arith.constant 6 : index
    %c0_65 = arith.constant 0 : index
    %c0_66 = arith.constant 0 : index
    %100 = vector.load %arg9[%c6, %c0_65, %c0_66] : memref<9x16x8xf32, #tpu.memory_space<vmem>>, vector<1x16x8xf32>
    %101 = vector.shape_cast %100 : vector<1x16x8xf32> to vector<16x8xf32>
    %cst_67 = arith.constant dense<0.000000e+00> : vector<16x256xf32>
    %102 = tpu.matmul %101, %99, %cst_67 {dimension_numbers = #tpu.dot_dimension_numbers<[1], [0], [0], [1], [0, 0, 1, 1], [], []>} : vector<16x8xf32>, vector<8x256xf32>, vector<16x256xf32> -> vector<16x256xf32>
    %103 = arith.addf %97, %102 : vector<16x256xf32>
    %c0_68 = arith.constant 0 : index
    %c144 = arith.constant 144 : index
    %104 = vector.load %arg13[%c0_68, %c144] : memref<8x512xf32, #tpu.memory_space<vmem>>, vector<8x256xf32>
    %c7 = arith.constant 7 : index
    %c0_69 = arith.constant 0 : index
    %c0_70 = arith.constant 0 : index
    %105 = vector.load %arg9[%c7, %c0_69, %c0_70] : memref<9x16x8xf32, #tpu.memory_space<vmem>>, vector<1x16x8xf32>
    %106 = vector.shape_cast %105 : vector<1x16x8xf32> to vector<16x8xf32>
    %cst_71 = arith.constant dense<0.000000e+00> : vector<16x256xf32>
    %107 = tpu.matmul %106, %104, %cst_71 {dimension_numbers = #tpu.dot_dimension_numbers<[1], [0], [0], [1], [0, 0, 1, 1], [], []>} : vector<16x8xf32>, vector<8x256xf32>, vector<16x256xf32> -> vector<16x256xf32>
    %108 = arith.addf %103, %107 : vector<16x256xf32>
    %c0_72 = arith.constant 0 : index
    %c145 = arith.constant 145 : index
    %109 = vector.load %arg13[%c0_72, %c145] : memref<8x512xf32, #tpu.memory_space<vmem>>, vector<8x256xf32>
    %110 = arith.mulf %109, %38 : vector<8x256xf32>
    %c8 = arith.constant 8 : index
    %c0_73 = arith.constant 0 : index
    %c0_74 = arith.constant 0 : index
    %111 = vector.load %arg9[%c8, %c0_73, %c0_74] : memref<9x16x8xf32, #tpu.memory_space<vmem>>, vector<1x16x8xf32>
    %112 = vector.shape_cast %111 : vector<1x16x8xf32> to vector<16x8xf32>
    %cst_75 = arith.constant dense<0.000000e+00> : vector<16x256xf32>
    %113 = tpu.matmul %112, %110, %cst_75 {dimension_numbers = #tpu.dot_dimension_numbers<[1], [0], [0], [1], [0, 0, 1, 1], [], []>} : vector<16x8xf32>, vector<8x256xf32>, vector<16x256xf32> -> vector<16x256xf32>
    %114 = arith.addf %108, %113 : vector<16x256xf32>
    %cst_76 = arith.constant 0.000000e+00 : f32
    %115 = vector.broadcast %cst_76 : f32 to vector<16x256xf32>
    %116 = arith.maximumf %114, %115 : vector<16x256xf32>
    %c0_77 = arith.constant 0 : index
    %c0_78 = arith.constant 0 : index
    %c0_79 = arith.constant 0 : index
    %117 = vector.load %arg11[%c0_77, %c0_78, %c0_79] : memref<4x256x64xf32, #tpu.memory_space<vmem>>, vector<1x256x64xf32>
    %118 = vector.shape_cast %117 : vector<1x256x64xf32> to vector<256x64xf32>
    %cst_80 = arith.constant dense<0.000000e+00> : vector<16x64xf32>
    %119 = tpu.matmul %116, %118, %cst_80 {dimension_numbers = #tpu.dot_dimension_numbers<[1], [0], [0], [1], [0, 0, 1, 1], [], []>} : vector<16x256xf32>, vector<256x64xf32>, vector<16x64xf32> -> vector<16x64xf32>
    %c1_81 = arith.constant 1 : index
    %c0_82 = arith.constant 0 : index
    %c0_83 = arith.constant 0 : index
    %120 = vector.load %arg11[%c1_81, %c0_82, %c0_83] : memref<4x256x64xf32, #tpu.memory_space<vmem>>, vector<1x256x64xf32>
    %121 = vector.shape_cast %120 : vector<1x256x64xf32> to vector<256x64xf32>
    %cst_84 = arith.constant dense<0.000000e+00> : vector<16x64xf32>
    %122 = tpu.matmul %116, %121, %cst_84 {dimension_numbers = #tpu.dot_dimension_numbers<[1], [0], [0], [1], [0, 0, 1, 1], [], []>} : vector<16x256xf32>, vector<256x64xf32>, vector<16x64xf32> -> vector<16x64xf32>
    %123 = arith.maximumf %119, %122 : vector<16x64xf32>
    %c2_85 = arith.constant 2 : index
    %c0_86 = arith.constant 0 : index
    %c0_87 = arith.constant 0 : index
    %124 = vector.load %arg11[%c2_85, %c0_86, %c0_87] : memref<4x256x64xf32, #tpu.memory_space<vmem>>, vector<1x256x64xf32>
    %125 = vector.shape_cast %124 : vector<1x256x64xf32> to vector<256x64xf32>
    %cst_88 = arith.constant dense<0.000000e+00> : vector<16x64xf32>
    %126 = tpu.matmul %116, %125, %cst_88 {dimension_numbers = #tpu.dot_dimension_numbers<[1], [0], [0], [1], [0, 0, 1, 1], [], []>} : vector<16x256xf32>, vector<256x64xf32>, vector<16x64xf32> -> vector<16x64xf32>
    %127 = arith.maximumf %123, %126 : vector<16x64xf32>
    %c3_89 = arith.constant 3 : index
    %c0_90 = arith.constant 0 : index
    %c0_91 = arith.constant 0 : index
    %128 = vector.load %arg11[%c3_89, %c0_90, %c0_91] : memref<4x256x64xf32, #tpu.memory_space<vmem>>, vector<1x256x64xf32>
    %129 = vector.shape_cast %128 : vector<1x256x64xf32> to vector<256x64xf32>
    %cst_92 = arith.constant dense<0.000000e+00> : vector<16x64xf32>
    %130 = tpu.matmul %116, %129, %cst_92 {dimension_numbers = #tpu.dot_dimension_numbers<[1], [0], [0], [1], [0, 0, 1, 1], [], []>} : vector<16x256xf32>, vector<256x64xf32>, vector<16x64xf32> -> vector<16x64xf32>
    %131 = arith.maximumf %127, %130 : vector<16x64xf32>
    %c0_93 = arith.constant 0 : index
    %c0_94 = arith.constant 0 : index
    %c0_95 = arith.constant 0 : index
    %132 = vector.load %arg12[%c0_93, %c0_94, %c0_95] : memref<2x16x64xf32, #tpu.memory_space<vmem>>, vector<1x16x64xf32>
    %133 = vector.shape_cast %132 : vector<1x16x64xf32> to vector<16x64xf32>
    %134 = vector.shape_cast %131 : vector<16x64xf32> to vector<1x16x64xf32>
    tpu.vector_store %arg12[%c0_93, %c0_94, %c0_95], %134 {strides = array<i32>} : memref<2x16x64xf32, #tpu.memory_space<vmem>>, vector<1x16x64xf32>,
    %c1_96 = arith.constant 1 : index
    %c0_97 = arith.constant 0 : index
    %c0_98 = arith.constant 0 : index
    %135 = vector.load %arg1[%c1_96, %c0_97, %c0_98] : memref<2x4x256xf32, #tpu.memory_space<vmem>>, vector<1x4x256xf32>
    %136 = vector.shape_cast %135 : vector<1x4x256xf32> to vector<4x256xf32>
    %cst_99 = arith.constant dense<0.000000e+00> : vector<8x256xf32>
    %137 = tpu.matmul %0, %136, %cst_99 {dimension_numbers = #tpu.dot_dimension_numbers<[1], [0], [0], [1], [0, 0, 1, 1], [], []>} : vector<8x4xf32>, vector<4x256xf32>, vector<8x256xf32> -> vector<8x256xf32>
    %c1_100 = arith.constant 1 : index
    %c0_101 = arith.constant 0 : index
    %c0_102 = arith.constant 0 : index
    %138 = vector.load %arg2[%c1_100, %c0_101, %c0_102] : memref<2x4x256xf32, #tpu.memory_space<vmem>>, vector<1x4x256xf32>
    %139 = vector.shape_cast %138 : vector<1x4x256xf32> to vector<4x256xf32>
    %cst_103 = arith.constant dense<0.000000e+00> : vector<8x256xf32>
    %140 = tpu.matmul %1, %139, %cst_103 {dimension_numbers = #tpu.dot_dimension_numbers<[1], [0], [0], [1], [0, 0, 1, 1], [], []>} : vector<8x4xf32>, vector<4x256xf32>, vector<8x256xf32> -> vector<8x256xf32>
    %141 = arith.addf %137, %140 : vector<8x256xf32>
    %142 = arith.addf %141, %5 : vector<8x256xf32>
    %cst_104 = arith.constant 0.000000e+00 : f32
    %143 = vector.broadcast %cst_104 : f32 to vector<8x256xf32>
    %144 = arith.maximumf %142, %143 : vector<8x256xf32>
    %cst_105 = arith.constant dense<0.000000e+00> : vector<8x256xf32>
    %145 = tpu.matmul %2, %144, %cst_105 {dimension_numbers = #tpu.dot_dimension_numbers<[1], [0], [0], [1], [0, 0, 1, 1], [], []>} : vector<8x8xf32>, vector<8x256xf32>, vector<8x256xf32> -> vector<8x256xf32>
    %146 = arith.addf %145, %8 : vector<8x256xf32>
    %147 = arith.negf %146 : vector<8x256xf32>
    %148 = math.exp %147 : vector<8x256xf32>
    %cst_106 = arith.constant 1.000000e+00 : f32
    %149 = vector.broadcast %cst_106 : f32 to vector<8x256xf32>
    %150 = arith.addf %149, %148 : vector<8x256xf32>
    %151 = arith.divf %149, %150 : vector<8x256xf32>
    %c1_107 = arith.constant 1 : index
    %c0_108 = arith.constant 0 : index
    %c0_109 = arith.constant 0 : index
    %152 = vector.load %arg3[%c1_107, %c0_108, %c0_109] : memref<2x8x256xf32, #tpu.memory_space<vmem>>, vector<1x8x256xf32>
    %153 = vector.shape_cast %152 : vector<1x8x256xf32> to vector<8x256xf32>
    %154 = arith.mulf %151, %153 : vector<8x256xf32>
    %c0_110 = arith.constant 0 : index
    %c128_111 = arith.constant 128 : index
    %155 = vector.load %arg13[%c0_110, %c128_111] : memref<8x512xf32, #tpu.memory_space<vmem>>, vector<8x256xf32>
    tpu.vector_store %arg13[%c0_110, %c128_111], %154 {strides = array<i32>} : memref<8x512xf32, #tpu.memory_space<vmem>>, vector<8x256xf32>,
    %c0_112 = arith.constant 0 : index
    %c111_113 = arith.constant 111 : index
    %156 = vector.load %arg13[%c0_112, %c111_113] : memref<8x512xf32, #tpu.memory_space<vmem>>, vector<8x256xf32>
    %157 = arith.mulf %156, %33 : vector<8x256xf32>
    %c0_114 = arith.constant 0 : index
    %c0_115 = arith.constant 0 : index
    %c0_116 = arith.constant 0 : index
    %158 = vector.load %arg9[%c0_114, %c0_115, %c0_116] : memref<9x16x8xf32, #tpu.memory_space<vmem>>, vector<1x16x8xf32>
    %159 = vector.shape_cast %158 : vector<1x16x8xf32> to vector<16x8xf32>
    %cst_117 = arith.constant dense<0.000000e+00> : vector<16x256xf32>
    %160 = tpu.matmul %159, %157, %cst_117 {dimension_numbers = #tpu.dot_dimension_numbers<[1], [0], [0], [1], [0, 0, 1, 1], [], []>} : vector<16x8xf32>, vector<8x256xf32>, vector<16x256xf32> -> vector<16x256xf32>
    %161 = arith.addf %11, %160 : vector<16x256xf32>
    %c0_118 = arith.constant 0 : index
    %c112_119 = arith.constant 112 : index
    %162 = vector.load %arg13[%c0_118, %c112_119] : memref<8x512xf32, #tpu.memory_space<vmem>>, vector<8x256xf32>
    %c1_120 = arith.constant 1 : index
    %c0_121 = arith.constant 0 : index
    %c0_122 = arith.constant 0 : index
    %163 = vector.load %arg9[%c1_120, %c0_121, %c0_122] : memref<9x16x8xf32, #tpu.memory_space<vmem>>, vector<1x16x8xf32>
    %164 = vector.shape_cast %163 : vector<1x16x8xf32> to vector<16x8xf32>
    %cst_123 = arith.constant dense<0.000000e+00> : vector<16x256xf32>
    %165 = tpu.matmul %164, %162, %cst_123 {dimension_numbers = #tpu.dot_dimension_numbers<[1], [0], [0], [1], [0, 0, 1, 1], [], []>} : vector<16x8xf32>, vector<8x256xf32>, vector<16x256xf32> -> vector<16x256xf32>
    %166 = arith.addf %161, %165 : vector<16x256xf32>
    %c0_124 = arith.constant 0 : index
    %c113_125 = arith.constant 113 : index
    %167 = vector.load %arg13[%c0_124, %c113_125] : memref<8x512xf32, #tpu.memory_space<vmem>>, vector<8x256xf32>
    %168 = arith.mulf %167, %38 : vector<8x256xf32>
    %c2_126 = arith.constant 2 : index
    %c0_127 = arith.constant 0 : index
    %c0_128 = arith.constant 0 : index
    %169 = vector.load %arg9[%c2_126, %c0_127, %c0_128] : memref<9x16x8xf32, #tpu.memory_space<vmem>>, vector<1x16x8xf32>
    %170 = vector.shape_cast %169 : vector<1x16x8xf32> to vector<16x8xf32>
    %cst_129 = arith.constant dense<0.000000e+00> : vector<16x256xf32>
    %171 = tpu.matmul %170, %168, %cst_129 {dimension_numbers = #tpu.dot_dimension_numbers<[1], [0], [0], [1], [0, 0, 1, 1], [], []>} : vector<16x8xf32>, vector<8x256xf32>, vector<16x256xf32> -> vector<16x256xf32>
    %172 = arith.addf %166, %171 : vector<16x256xf32>
    %c0_130 = arith.constant 0 : index
    %c127_131 = arith.constant 127 : index
    %173 = vector.load %arg13[%c0_130, %c127_131] : memref<8x512xf32, #tpu.memory_space<vmem>>, vector<8x256xf32>
    %174 = arith.mulf %173, %33 : vector<8x256xf32>
    %c3_132 = arith.constant 3 : index
    %c0_133 = arith.constant 0 : index
    %c0_134 = arith.constant 0 : index
    %175 = vector.load %arg9[%c3_132, %c0_133, %c0_134] : memref<9x16x8xf32, #tpu.memory_space<vmem>>, vector<1x16x8xf32>
    %176 = vector.shape_cast %175 : vector<1x16x8xf32> to vector<16x8xf32>
    %cst_135 = arith.constant dense<0.000000e+00> : vector<16x256xf32>
    %177 = tpu.matmul %176, %174, %cst_135 {dimension_numbers = #tpu.dot_dimension_numbers<[1], [0], [0], [1], [0, 0, 1, 1], [], []>} : vector<16x8xf32>, vector<8x256xf32>, vector<16x256xf32> -> vector<16x256xf32>
    %178 = arith.addf %172, %177 : vector<16x256xf32>
    %c0_136 = arith.constant 0 : index
    %c128_137 = arith.constant 128 : index
    %179 = vector.load %arg13[%c0_136, %c128_137] : memref<8x512xf32, #tpu.memory_space<vmem>>, vector<8x256xf32>
    %c4_138 = arith.constant 4 : index
    %c0_139 = arith.constant 0 : index
    %c0_140 = arith.constant 0 : index
    %180 = vector.load %arg9[%c4_138, %c0_139, %c0_140] : memref<9x16x8xf32, #tpu.memory_space<vmem>>, vector<1x16x8xf32>
    %181 = vector.shape_cast %180 : vector<1x16x8xf32> to vector<16x8xf32>
    %cst_141 = arith.constant dense<0.000000e+00> : vector<16x256xf32>
    %182 = tpu.matmul %181, %179, %cst_141 {dimension_numbers = #tpu.dot_dimension_numbers<[1], [0], [0], [1], [0, 0, 1, 1], [], []>} : vector<16x8xf32>, vector<8x256xf32>, vector<16x256xf32> -> vector<16x256xf32>
    %183 = arith.addf %178, %182 : vector<16x256xf32>
    %c0_142 = arith.constant 0 : index
    %c129_143 = arith.constant 129 : index
    %184 = vector.load %arg13[%c0_142, %c129_143] : memref<8x512xf32, #tpu.memory_space<vmem>>, vector<8x256xf32>
    %185 = arith.mulf %184, %38 : vector<8x256xf32>
    %c5_144 = arith.constant 5 : index
    %c0_145 = arith.constant 0 : index
    %c0_146 = arith.constant 0 : index
    %186 = vector.load %arg9[%c5_144, %c0_145, %c0_146] : memref<9x16x8xf32, #tpu.memory_space<vmem>>, vector<1x16x8xf32>
    %187 = vector.shape_cast %186 : vector<1x16x8xf32> to vector<16x8xf32>
    %cst_147 = arith.constant dense<0.000000e+00> : vector<16x256xf32>
    %188 = tpu.matmul %187, %185, %cst_147 {dimension_numbers = #tpu.dot_dimension_numbers<[1], [0], [0], [1], [0, 0, 1, 1], [], []>} : vector<16x8xf32>, vector<8x256xf32>, vector<16x256xf32> -> vector<16x256xf32>
    %189 = arith.addf %183, %188 : vector<16x256xf32>
    %c0_148 = arith.constant 0 : index
    %c143_149 = arith.constant 143 : index
    %190 = vector.load %arg13[%c0_148, %c143_149] : memref<8x512xf32, #tpu.memory_space<vmem>>, vector<8x256xf32>
    %191 = arith.mulf %190, %33 : vector<8x256xf32>
    %c6_150 = arith.constant 6 : index
    %c0_151 = arith.constant 0 : index
    %c0_152 = arith.constant 0 : index
    %192 = vector.load %arg9[%c6_150, %c0_151, %c0_152] : memref<9x16x8xf32, #tpu.memory_space<vmem>>, vector<1x16x8xf32>
    %193 = vector.shape_cast %192 : vector<1x16x8xf32> to vector<16x8xf32>
    %cst_153 = arith.constant dense<0.000000e+00> : vector<16x256xf32>
    %194 = tpu.matmul %193, %191, %cst_153 {dimension_numbers = #tpu.dot_dimension_numbers<[1], [0], [0], [1], [0, 0, 1, 1], [], []>} : vector<16x8xf32>, vector<8x256xf32>, vector<16x256xf32> -> vector<16x256xf32>
    %195 = arith.addf %189, %194 : vector<16x256xf32>
    %c0_154 = arith.constant 0 : index
    %c144_155 = arith.constant 144 : index
    %196 = vector.load %arg13[%c0_154, %c144_155] : memref<8x512xf32, #tpu.memory_space<vmem>>, vector<8x256xf32>
    %c7_156 = arith.constant 7 : index
    %c0_157 = arith.constant 0 : index
    %c0_158 = arith.constant 0 : index
    %197 = vector.load %arg9[%c7_156, %c0_157, %c0_158] : memref<9x16x8xf32, #tpu.memory_space<vmem>>, vector<1x16x8xf32>
    %198 = vector.shape_cast %197 : vector<1x16x8xf32> to vector<16x8xf32>
    %cst_159 = arith.constant dense<0.000000e+00> : vector<16x256xf32>
    %199 = tpu.matmul %198, %196, %cst_159 {dimension_numbers = #tpu.dot_dimension_numbers<[1], [0], [0], [1], [0, 0, 1, 1], [], []>} : vector<16x8xf32>, vector<8x256xf32>, vector<16x256xf32> -> vector<16x256xf32>
    %200 = arith.addf %195, %199 : vector<16x256xf32>
    %c0_160 = arith.constant 0 : index
    %c145_161 = arith.constant 145 : index
    %201 = vector.load %arg13[%c0_160, %c145_161] : memref<8x512xf32, #tpu.memory_space<vmem>>, vector<8x256xf32>
    %202 = arith.mulf %201, %38 : vector<8x256xf32>
    %c8_162 = arith.constant 8 : index
    %c0_163 = arith.constant 0 : index
    %c0_164 = arith.constant 0 : index
    %203 = vector.load %arg9[%c8_162, %c0_163, %c0_164] : memref<9x16x8xf32, #tpu.memory_space<vmem>>, vector<1x16x8xf32>
    %204 = vector.shape_cast %203 : vector<1x16x8xf32> to vector<16x8xf32>
    %cst_165 = arith.constant dense<0.000000e+00> : vector<16x256xf32>
    %205 = tpu.matmul %204, %202, %cst_165 {dimension_numbers = #tpu.dot_dimension_numbers<[1], [0], [0], [1], [0, 0, 1, 1], [], []>} : vector<16x8xf32>, vector<8x256xf32>, vector<16x256xf32> -> vector<16x256xf32>
    %206 = arith.addf %200, %205 : vector<16x256xf32>
    %cst_166 = arith.constant 0.000000e+00 : f32
    %207 = vector.broadcast %cst_166 : f32 to vector<16x256xf32>
    %208 = arith.maximumf %206, %207 : vector<16x256xf32>
    %c0_167 = arith.constant 0 : index
    %c0_168 = arith.constant 0 : index
    %c0_169 = arith.constant 0 : index
    %209 = vector.load %arg11[%c0_167, %c0_168, %c0_169] : memref<4x256x64xf32, #tpu.memory_space<vmem>>, vector<1x256x64xf32>
    %210 = vector.shape_cast %209 : vector<1x256x64xf32> to vector<256x64xf32>
    %cst_170 = arith.constant dense<0.000000e+00> : vector<16x64xf32>
    %211 = tpu.matmul %208, %210, %cst_170 {dimension_numbers = #tpu.dot_dimension_numbers<[1], [0], [0], [1], [0, 0, 1, 1], [], []>} : vector<16x256xf32>, vector<256x64xf32>, vector<16x64xf32> -> vector<16x64xf32>
    %c1_171 = arith.constant 1 : index
    %c0_172 = arith.constant 0 : index
    %c0_173 = arith.constant 0 : index
    %212 = vector.load %arg11[%c1_171, %c0_172, %c0_173] : memref<4x256x64xf32, #tpu.memory_space<vmem>>, vector<1x256x64xf32>
    %213 = vector.shape_cast %212 : vector<1x256x64xf32> to vector<256x64xf32>
    %cst_174 = arith.constant dense<0.000000e+00> : vector<16x64xf32>
    %214 = tpu.matmul %208, %213, %cst_174 {dimension_numbers = #tpu.dot_dimension_numbers<[1], [0], [0], [1], [0, 0, 1, 1], [], []>} : vector<16x256xf32>, vector<256x64xf32>, vector<16x64xf32> -> vector<16x64xf32>
    %215 = arith.maximumf %211, %214 : vector<16x64xf32>
    %c2_175 = arith.constant 2 : index
    %c0_176 = arith.constant 0 : index
    %c0_177 = arith.constant 0 : index
    %216 = vector.load %arg11[%c2_175, %c0_176, %c0_177] : memref<4x256x64xf32, #tpu.memory_space<vmem>>, vector<1x256x64xf32>
    %217 = vector.shape_cast %216 : vector<1x256x64xf32> to vector<256x64xf32>
    %cst_178 = arith.constant dense<0.000000e+00> : vector<16x64xf32>
    %218 = tpu.matmul %208, %217, %cst_178 {dimension_numbers = #tpu.dot_dimension_numbers<[1], [0], [0], [1], [0, 0, 1, 1], [], []>} : vector<16x256xf32>, vector<256x64xf32>, vector<16x64xf32> -> vector<16x64xf32>
    %219 = arith.maximumf %215, %218 : vector<16x64xf32>
    %c3_179 = arith.constant 3 : index
    %c0_180 = arith.constant 0 : index
    %c0_181 = arith.constant 0 : index
    %220 = vector.load %arg11[%c3_179, %c0_180, %c0_181] : memref<4x256x64xf32, #tpu.memory_space<vmem>>, vector<1x256x64xf32>
    %221 = vector.shape_cast %220 : vector<1x256x64xf32> to vector<256x64xf32>
    %cst_182 = arith.constant dense<0.000000e+00> : vector<16x64xf32>
    %222 = tpu.matmul %208, %221, %cst_182 {dimension_numbers = #tpu.dot_dimension_numbers<[1], [0], [0], [1], [0, 0, 1, 1], [], []>} : vector<16x256xf32>, vector<256x64xf32>, vector<16x64xf32> -> vector<16x64xf32>
    %223 = arith.maximumf %219, %222 : vector<16x64xf32>
    %c1_183 = arith.constant 1 : index
    %c0_184 = arith.constant 0 : index
    %c0_185 = arith.constant 0 : index
    %224 = vector.load %arg12[%c1_183, %c0_184, %c0_185] : memref<2x16x64xf32, #tpu.memory_space<vmem>>, vector<1x16x64xf32>
    %225 = vector.shape_cast %224 : vector<1x16x64xf32> to vector<16x64xf32>
    %226 = vector.shape_cast %223 : vector<16x64xf32> to vector<1x16x64xf32>
    tpu.vector_store %arg12[%c1_183, %c0_184, %c0_185], %226 {strides = array<i32>} : memref<2x16x64xf32, #tpu.memory_space<vmem>>, vector<1x16x64xf32>,
    return
  }
  func.func @transform_0(%arg0: i32) -> (i32, i32, i32) {
    %c0_i32 = arith.constant 0 : i32
    %c0_i32_0 = arith.constant 0 : i32
    %c0_i32_1 = arith.constant 0 : i32
    return %arg0, %c0_i32, %c0_i32_0 : i32, i32, i32
  }
  func.func @transform_1(%arg0: i32) -> (i32, i32, i32) {
    %c0_i32 = arith.constant 0 : i32
    %c0_i32_0 = arith.constant 0 : i32
    %c0_i32_1 = arith.constant 0 : i32
    return %arg0, %c0_i32, %c0_i32_0 : i32, i32, i32
  }
  func.func @transform_2(%arg0: i32) -> (i32, i32, i32) {
    %c0_i32 = arith.constant 0 : i32
    %c0_i32_0 = arith.constant 0 : i32
    %c0_i32_1 = arith.constant 0 : i32
    return %arg0, %c0_i32, %c0_i32_0 : i32, i32, i32
  }
  func.func @transform_3(%arg0: i32) -> (i32, i32) {
    %c0_i32 = arith.constant 0 : i32
    %c0_i32_0 = arith.constant 0 : i32
    %c0_i32_1 = arith.constant 0 : i32
    return %c0_i32, %c0_i32_0 : i32, i32
  }
  func.func @transform_4(%arg0: i32) -> (i32, i32) {
    %c0_i32 = arith.constant 0 : i32
    %c0_i32_0 = arith.constant 0 : i32
    %c0_i32_1 = arith.constant 0 : i32
    return %c0_i32, %c0_i32_0 : i32, i32
  }
  func.func @transform_5(%arg0: i32) -> (i32, i32) {
    %c0_i32 = arith.constant 0 : i32
    %c0_i32_0 = arith.constant 0 : i32
    %c0_i32_1 = arith.constant 0 : i32
    return %c0_i32, %c0_i32_0 : i32, i32
  }
  func.func @transform_6(%arg0: i32) -> (i32, i32) {
    %c0_i32 = arith.constant 0 : i32
    %c0_i32_0 = arith.constant 0 : i32
    %c0_i32_1 = arith.constant 0 : i32
    return %c0_i32, %c0_i32_0 : i32, i32
  }
  func.func @transform_7(%arg0: i32) -> (i32, i32) {
    %c0_i32 = arith.constant 0 : i32
    %c0_i32_0 = arith.constant 0 : i32
    %c0_i32_1 = arith.constant 0 : i32
    return %c0_i32, %c0_i32_0 : i32, i32
  }
  func.func @transform_8(%arg0: i32) -> (i32, i32, i32) {
    %c0_i32 = arith.constant 0 : i32
    %c0_i32_0 = arith.constant 0 : i32
    %c0_i32_1 = arith.constant 0 : i32
    %c0_i32_2 = arith.constant 0 : i32
    return %c0_i32, %c0_i32_0, %c0_i32_1 : i32, i32, i32
  }
  func.func @transform_9(%arg0: i32) -> (i32, i32) {
    %c0_i32 = arith.constant 0 : i32
    %c0_i32_0 = arith.constant 0 : i32
    %c0_i32_1 = arith.constant 0 : i32
    return %c0_i32, %c0_i32_0 : i32, i32
  }
  func.func @transform_10(%arg0: i32) -> (i32, i32, i32) {
    %c0_i32 = arith.constant 0 : i32
    %c0_i32_0 = arith.constant 0 : i32
    %c0_i32_1 = arith.constant 0 : i32
    %c0_i32_2 = arith.constant 0 : i32
    return %c0_i32, %c0_i32_0, %c0_i32_1 : i32, i32, i32
  }
  func.func @transform_11(%arg0: i32) -> (i32, i32, i32) {
    %c0_i32 = arith.constant 0 : i32
    %c0_i32_0 = arith.constant 0 : i32
    %c0_i32_1 = arith.constant 0 : i32
    return %arg0, %c0_i32, %c0_i32_0 : i32, i32, i32
  }
}

</mosaic_0001>

<bundles_post_ra>
// kernel: tpu_custom_call.1
= control target key start
LH: loop header
LB: loop body
LE: loop exit
PB: predicated region body
PF: predicated region fallthrough
CT: control target
= control target key end

     0   :  { %s6414_s0 = inlined_call_operand.vmem [shape: f32[4,4,256], index: 0, kind: input, shape index: {}]   ;;  %s6415_s1 = inlined_call_operand.vmem [shape: f32[4,4,256], index: 1, kind: input, shape index: {}]   ;;  %s6416_s2 = inlined_call_operand.vmem [shape: f32[4,8,256], index: 2, kind: input, shape index: {}]   ;;  %s6417_s3 = inlined_call_operand.vmem [shape: f32[8,4], index: 3, kind: input, shape index: {}]   ;;  %s6418_s4 = inlined_call_operand.vmem [shape: f32[8,4], index: 4, kind: input, shape index: {}]   ;;  %s6419_s5 = inlined_call_operand.vmem [shape: f32[8,1], index: 5, kind: input, shape index: {}]   ;;  %s6420_s6 = inlined_call_operand.vmem [shape: f32[8,8], index: 6, kind: input, shape index: {}]   ;;  %s6421_s7 = inlined_call_operand.vmem [shape: f32[8,1], index: 7, kind: input, shape index: {}]   ;;  %s6422_s8 = inlined_call_operand.vmem [shape: f32[9,16,8], index: 8, kind: input, shape index: {}]   ;;  %s6423_s9 = inlined_call_operand.vmem [shape: f32[16,1], index: 9, kind: input, shape index: {}]   ;;  %s6424_s10 = inlined_call_operand.vmem [shape: f32[4,256,64], index: 10, kind: input, shape index: {}]   ;;  %s6425_s11 = inlined_call_operand.hbm [shape: f32[4,16,64], index: 11, kind: output, shape index: {}]  }
   0x1   :  { %6492 = sst [smem:[#allocation52_spill]] %s6414_s0 }
   0x2   :  { %6493 = sst [smem:[#allocation53_spill]] %s6415_s1 }
   0x3   :  { %6494 = sst [smem:[#allocation54_spill]] %s6416_s2 }
   0x4   :  { %6495 = sst [smem:[#allocation55_spill]] %s6419_s5 }
   0x5   :  { %6496 = sst [smem:[#allocation56_spill]] %s6421_s7 }
   0x6   :  { %16 = vsyncpa [#allocation4], 0 }
   0x7   :  { %18 = vsyncpa [#allocation4 + $0x1], 0  ;;  %s5121_s17 = smov 0   ;;  %s5123_s18 = smov 0  }
   0x8   :  { %s5125_s19 = smov 0   ;;  %s5127_s20 = smov 0  }
   0x9 LB: > { %s5142_s21 = sadd.s32 4294967295, %s5046_s20   ;;  %s3930_s22 = sadd.s32 4294967294, %s5046_s20   ;;  %s5046_s20 = sphi %s5127_s20, %s6608_s20   ;;  %s5042_s19 = sphi %s5125_s19, %s6607_s19   ;;  %s5038_s18 = sphi %s5123_s18, %s6606_s18   ;;  %s5034_s17 = sphi %s5121_s17, %s6605_s17  }
   0xa   : > { %s5146_s23 = sadd.s32 1, %s5046_s20   ;;  %s277_s24 = sadd.s32 1, %s5042_s19 }
   0xb   : > { %s274_s25 = ssub.s32 %s5046_s20, %s5146_s23  ;;  %p287_p0 = scmp.ne.s32.totalorder %s5042_s19, %s5038_s18 }
   0xc   : > { %p275_p1 = scmp.eq.s32.totalorder %s274_s25, 0  ;;  %p288_p2 = scmp.eq.s32.totalorder %s5142_s21, 1 }
   0xd   : > { %p293_p3 = scmp.ne.s32.totalorder %s5038_s18, %s5034_s17  ;;  %p294_p4 = scmp.eq.s32.totalorder %s3930_s22, 1 }
   0xe   : > { %s5157_s26 = scalar_select %p275_p1, %s5042_s19, %s277_s24  }
   0xf   : > { %p5159_p5 = por %p288_p2, %p287_p0  ;;  %p5163_p6 = por %p294_p4, %p293_p3 }
  0x10   : > { %p3933_p7 = scmp.ge.s32.totalorder %s5046_s20, 1  ;;  %p366_p8 = scmp.lt.s32.totalorder %s5046_s20, 3 }
  0x12   : > { %p367_p9 = pnand %p3933_p7, %p366_p8 }
  0x14   : > { %370 = sbr.rel (%p367_p9) target bundleno = 2225 (0x8b1), region = 64 }
  0x1b   : > { %s3935_s29 = sshll.u32 %s5142_s21, 1  ;;  %v6442_v0 = vmov 0.0   ;;  %s6499_s5 = sld [smem:[#allocation55_spill]]  ;;  %v5049_v2 = vmov 0   ;;  %vm513_vm0 = vcmask 1043456   ;;  %v442_v8 = vld [vmem:[%s6418_s4] sm:$0xff]  ;;  %v468_v10 = vlaneseq }
  0x1c   : > { %p420_p10 = scmp.lt.s32.totalorder %s3935_s29, 3  ;;  %582 = vmatprep.mubr.f32.mxu0 %v6442_v0  ;;  %741 = vmatprep.mubr.f32.mxu1 %v6442_v0  ;;  %s6500_s7 = sld [smem:[#allocation56_spill]]  ;;  %vm509_vm1 = vcmask 31744   ;;  %v441_v9 = vld [vmem:[%s6417_s3] sm:$0xff]  ;;  %vm673_vm6 = vcmask 64512   ;;  %vm775_vm7 = vcmask 908288  }
  0x1d   : > { %4926 = vset.pattern.permute.xlu0 %v5049_v2  ;;  %4957 = vset.pattern.permute.xlu1 %v5049_v2  ;;  %s6501_s0 = sld [smem:[#allocation52_spill]]  ;;  %s6502_s1 = sld [smem:[#allocation53_spill]]  ;;  %v469_v11 = vand.u32 127, %v468_v10  ;;  %v443_v28 = vld [vmem:[%s6420_s6] sm:$0xff]  ;;  %vm996_vm8 = vcmask 924672   ;;  %vm1112_vm9 = vcmask 1039360  }
  0x1e   : > { %s6610_s29 = smov (!%p420_p10, %s3935_s29), 3  ;;  %s6426_s22 = smov 111   ;;  %vm1132_vm10 = vcmask 7168   ;;  %vm1016_vm11 = vcmask 121856   ;;  %vm794_vm12 = vcmask 138240   ;;  %vm898_vm13 = vcmask 130048  }
  0x1f   : > { %s4234_s15 = sshll.u32 %s6610_s29, 3  ;;  %v470_v12 = vadd.s32 128, %v469_v11  ;;  %v475_v13 = vand.u32 15, %v469_v11  ;;  %s6430_s25 = smov 127   ;;  %vm1557_vm14 = vcmask 916480   ;;  %vm2204_vm15 = vcmask 523264  }
  0x20   : > { %s6428_s30 = smov 113   ;;  %s6436_s13 = smov 15  }
  0x21   : > { %v444_v1 = vld [vmem:[%s6499_s5] sm:$0xff]  ;;  %v482_v14 = vand.u32 15, %v470_v12  ;;  %vm495_vm2 = vcmp.ne.s32.totalorder %v475_v13, 0  ;;  %vm499_vm3 = vcmp.ne.s32.totalorder %v475_v13, 15  ;;  %s6432_s14 = smov 1   ;;  %s6503_s2 = sld [smem:[#allocation54_spill]] }
  0x22   : > { %447 = vperm.xlu0 %4926, %v444_v1   ;;  %v450_v3 = vld [vmem:[%s6500_s7] sm:$0xff]  ;;  %v497_v15 = vsel %vm495_vm2, 1.0, %v6442_v0  ;;  %v501_v17 = vsel %vm499_vm3, 1.0, %v6442_v0  ;;  %s6434_s16 = smov 112   ;;  %s6558_s5 = smov 112  }
  0x23   : > { %s5184_s24 = scalar_lea.vmem %s6501_s0, %s4234_s15  ;;  %s5189_s12 = scalar_lea.vmem %s6502_s1, %s4234_s15  ;;  %vm496_vm4 = vcmp.ne.s32.totalorder %v482_v14, 0  ;;  %vm500_vm5 = vcmp.ne.s32.totalorder %v482_v14, 15 }
  0x24   : > { %v505_v4 = vld [vmem:[%s5184_s24] sm:$0xff]  ;;  %v498_v16 = vsel %vm496_vm4, 1.0, %v6442_v0  ;;  %v502_v18 = vsel %vm500_vm5, 1.0, %v6442_v0  ;;  %s4236_s15 = sshll.u32 %s6610_s29, 4  ;;  %s6440_s29 = smov 17  }
  0x25   : > { %v506_v5 = vld [vmem:[%s5189_s12] sm:$0xff]  ;;  %v590_v7 = vcombine.high %v505_v4, %v505_v4  ;;  %v4927_v19 = vpack.i.bf16 %v498_v16, %v497_v15  ;;  %v4932_v20 = vpack.i.bf16 %v502_v18, %v501_v17  ;;  %s416_s0 = sand.u32 1, %s5038_s18  }
  0x26   : > { %453 = vperm.xlu0 %4926, %v450_v3   ;;  %v508_v6 = vcombine.high %v506_v5, %v506_v5 }
  0x27   : > { %4928 = vrot.lane.b32.xlu1 %v4927_v19, %s6426_s22  ;;  %s6438_s22 = smov 16  }
  0x28   : > { %3944 = vmatprep.subr.msk.mxu0 %vm513_vm0, %v508_v6 }
  0x29   : > { %3945 = vmatpush1.msk.msra.mxu0 %vm513_vm0, %v506_v5 }
  0x2a   : > { %3946 = vmatmul.mubr.msk.f32.vlgmr.msra.gmra.mrb[0].mxu0 %vm509_vm1, %v442_v8  ;;  %3947 = vmatprep.subr.msk.mxu0 %vm513_vm0, %v590_v7 }
  0x2b   : > { %3948 = vmatpush1.msk.msra.mxu0 %vm513_vm0, %v505_v4  ;;  %662 = vmatprep.mubr.f32.mxu0 %v6442_v0 }
  0x2c   : > { %4938 = vrot.lane.b32.xlu0 %v4927_v19, %s6430_s25  ;;  %4933 = vrot.lane.b32.xlu1 %v4932_v20, %s6428_s30  ;;  %s5232_s30 = scalar_lea.vmem %s6503_s2, %s4236_s15  ;;  %s6504_s15 = smov 113  }
  0x2d   : > { %v760_v43 = vld [vmem:[%s5232_s30] sm:$0xff]  ;;  %v761_v44 = vld [vmem:[%s5232_s30 + $0x8] sm:$0xff]  ;;  %s6553_s2 = smov 17  }
  0x30   : > { %4948 = vrot.lane.b32.xlu0 %v4927_v19, %s6436_s13  ;;  %4943 = vrot.lane.b32.xlu1 %v4932_v20, %s6432_s14 }
  0x32   : > { %3949 = vmatmul.mubr.msk.f32.vlgmr.msra.gmra.mrb[0].mxu0 %vm509_vm1, %v441_v9 }
  0x99   : > { %v4929_v40 = vpop.permute.xlu1 %4928 }
  0x9a   : > { %v5234_v41 = vunpack.i.h.bf16 %v4929_v40  ;;  %v4930_v42 = vunpack.i.l.bf16 %v4929_v40 }
  0x9c   : > { %v5240_v46 = vsel %vm775_vm7, %v4930_v42, %v5234_v41  ;;  %v5252_v52 = vmul.f32 0.0, %v4930_v42 }
  0x9e   : > { %v4934_v53 = vpop.permute.xlu1 %4933 }
  0x9f   : > { %v5254_v54 = vunpack.i.h.bf16 %v4934_v53  ;;  %v4935_v55 = vunpack.i.l.bf16 %v4934_v53  ;;  %v457_v53 = vld [vmem:[%s6423_s9 + $0x8] sm:$0xff] }
  0xa1   : > { %v5215_v21 = vpop.permute.xlu0 %447  ;;  %v5263_v56 = vsel %vm996_vm8, %v4935_v55, %v5254_v54  ;;  %v5273_v61 = vmul.f32 0.0, %v4935_v55 }
  0xa2   : > { %v4944_v62 = vpop.permute.xlu1 %4943 }
  0xa3   : > { %v4946_v2 = vunpack.i.h.bf16 %v4944_v62  ;;  %v5282_v3 = vunpack.i.l.bf16 %v4944_v62  ;;  %v1769_v62 = vld [vmem:[%s6424_s10 + $0x10] sm:$0xff] }
  0xa5   : > { %v5224_v29 = vpop.permute.xlu0 %453  ;;  %v5296_v8 = vsel %vm1132_vm10, %v5282_v3, %v4946_v2  ;;  %v5303_v12 = vmul.f32 0.0, %v4946_v2 }
  0xa9   : > { %v4939_v57 = vpop.permute.xlu0 %4938 }
  0xaa   : > { %v5267_v58 = vunpack.i.h.bf16 %v4939_v57  ;;  %v4940_v59 = vunpack.i.l.bf16 %v4939_v57 }
  0xac   : > { %v5280_v1 = vsel %vm1112_vm9, %v4940_v59, %v5267_v58  ;;  %v5291_v6 = vmul.f32 0.0, %v4940_v59  ;;  %v1785_v59 = vld [vmem:[%s6424_s10 + $0x90] sm:$0xff] }
  0xad   : > { %v4949_v7 = vpop.permute.xlu0 %4948 }
  0xae   : > { %v4951_v9 = vunpack.i.h.bf16 %v4949_v7  ;;  %v5299_v10 = vunpack.i.l.bf16 %v4949_v7 }
  0xb0   : > { %v5312_v14 = vsel %vm1016_vm11, %v5299_v10, %v4951_v9  ;;  %v5316_v15 = vmul.f32 0.0, %v4951_v9 }
 0x105   : > { %v664_v22 = vpop.f32.mrb[0].mxu0 }
 0x106   : > { %v669_v23 = vadd.f32 %v664_v22, %v5215_v21  ;;  %v666_v24 = vpop.f32.mrb[1].mxu0 }
 0x107   : > { %v670_v25 = vadd.f32 %v666_v24, %v5215_v21 }
 0x108   : > { %v671_v27 = vmax.f32 %v669_v23, 0.0  ;;  %v783_v23 = vld [vmem:[%s6422_s8] sm:$0xff] }
 0x109   : > { %v672_v26 = vmax.f32 %v670_v25, 0.0 }
 0x10b   : > { %677 = vmatprep.subr.mxu1 %v672_v26 }
 0x10c   : > { %678 = vmatpush1.msra.mxu1 %v671_v27 }
 0x10d   : > { %3950 = vmatmul.mubr.msk.f32.vlgmr.msra.gmra.mrb[0].mxu1 %vm673_vm6, %v443_v28 }
 0x10e   : > { %869 = vmatprep.mubr.f32.mxu1 %v6442_v0 }
 0x1e0   : > { %v743_v30 = vpop.f32.mrb[0].mxu1 }
 0x1e1   : > { %v744_v31 = vadd.f32 %v743_v30, %v5224_v29  ;;  %v745_v32 = vpop.f32.mrb[1].mxu1 }
 0x1e2   : > { %v746_v33 = vadd.f32 %v745_v32, %v5224_v29  ;;  %v784_v32 = vld [vmem:[%s6422_s8 + $0x8] sm:$0xff] }
 0x1e3   : > { %v3951_v34 = vmul.f32 -1.442695, %v744_v31 }
 0x1e4   : > { %v3952_v35 = vmul.f32 -1.442695, %v746_v33 }
 0x1e5   : > { %4962 = vpow2.f32 %v3951_v34 }
 0x1e6   : > { %4964 = vpow2.f32 %v3952_v35 }
 0x1ef   : > { %v4963_v36 = vpop.eup %4962 }
 0x1f0   : > { %v4965_v37 = vpop.eup %4964  ;;  %v754_v38 = vadd.f32 1.0, %v4963_v36  ;;  %v456_v36 = vld [vmem:[%s6423_s9] sm:$0xff] }
 0x1f1   : > { %v755_v39 = vadd.f32 1.0, %v4965_v37 }
 0x1f2   : > { %4966 = vrcp.f32 %v754_v38  ;;  %v3955_v38 = vld [vmem:[%s6422_s8 + $0x10] sm:$0xff] }
 0x1f3   : > { %4968 = vrcp.f32 %v755_v39 }
 0x1fc   : > { %v4967_v45 = vpop.eup %4966 }
 0x1fd   : > { %v4969_v47 = vpop.eup %4968  ;;  %v5242_v48 = vmul.f32 %v4967_v45, %v760_v43  ;;  %v1783_v43 = vld [vmem:[%s6424_s10 + $0x80] sm:$0xff] }
 0x1fe   : > { %v5244_v49 = vmul.f32 %v4969_v47, %v761_v44  ;;  %v1784_v44 = vld [vmem:[%s6424_s10 + $0x88] sm:$0xff]  ;;  %v1767_v47 = vld [vmem:[%s6424_s10] sm:$0xff] }
 0x1ff   : > { %v781_v50 = vmul.f32 %v5240_v46, %v5242_v48  ;;  %v1002_v60 = vmul.f32 %v5263_v56, %v5242_v48  ;;  %v1118_v4 = vmul.f32 %v5280_v1, %v5242_v48  ;;  %v1325_v13 = vmul.f32 %v5282_v3, %v5242_v48 }
 0x200   : > { %v782_v51 = vmul.f32 %v5234_v41, %v5244_v49  ;;  %v1003_v63 = vmul.f32 %v5254_v54, %v5244_v49  ;;  %v1119_v5 = vmul.f32 %v5267_v58, %v5244_v49  ;;  %v1326_v11 = vmul.f32 %v5296_v8, %v5244_v49 }
 0x201   : > { %790 = vrot.lane.b32.xlu1 %v781_v50, %s6440_s29  ;;  %v1440_v16 = vmul.f32 %v5312_v14, %v5244_v49  ;;  %v1439_v17 = vmul.f32 %v5299_v10, %v5242_v48  ;;  %v5374_v45 = vpack.c.bf16 %v1784_v44, %v1783_v43  ;;  %v1768_v50 = vld [vmem:[%s6424_s10 + $0x8] sm:$0xff]  ;;  %v1775_v43 = vld [vmem:[%s6424_s10 + $0x40] sm:$0xff] }
 0x202   : > { %792 = vrot.lane.b32.xlu0 %v782_v51, %s6440_s29  ;;  %v3956_v51 = vld [vmem:[%s6422_s8 + $0x18] sm:$0xff]  ;;  %v5390_v55 = vpack.c.bf16 %v1768_v50, %v1767_v47  ;;  %v1776_v44 = vld [vmem:[%s6424_s10 + $0x48] sm:$0xff]  ;;  %v5484_v50 = vld [vmem:[%s6422_s8 + $0x30] sm:$0xff] }
 0x203   : > { %4544 = vmatprep.subr.bf16.mxu0 %v5374_v45 }
 0x204   : > { %4546 = vmatpush3.bf16.msra.mxu0 %v5390_v55 }
 0x205   : > { %788 = vrot.lane.b32.xlu1 %v5252_v52, %s6440_s29 }
 0x206   : > { %4953 = vrot.lane.b32.xlu0 %v4932_v20, %s6440_s29  ;;  %s3934_s29 = sshll.u32 %s416_s0, 5 }
 0x209   : > { %894 = vrot.lane.b32.xlu1 %v5242_v48, %s6438_s22 }
 0x20a   : > { %896 = vrot.lane.b32.xlu0 %v5244_v49, %s6438_s22 }
 0x20d   : > { %892 = vrot.lane.b32.xlu1 %v6442_v0, %s6438_s22  ;;  %s5058_s22 = smov [#allocation3]  }
 0x20e   : > { %1012 = vrot.lane.b32.xlu0 %v1002_v60, %s6436_s13  ;;  %v1786_v60 = vld [vmem:[%s6424_s10 + $0x98] sm:$0xff]  ;;  %s4988_s1 = sshll.u32 %s5058_s22, 4  ;;  %s4989_s1 = int_to_ptr.vmem [resolvable:$false] %s4988_s1 }
 0x211   : > { %1014 = vrot.lane.b32.xlu1 %v1003_v63, %s6436_s13 }
 0x212   : > { %1010 = vrot.lane.b32.xlu0 %v5273_v61, %s6436_s13  ;;  %s6143_s13 = scalar_lea.vmem [#allocation3], %s3934_s29  ;;  %s6373_s29 = scalar_lea.sflag [#allocation4], %s416_s0 }
 0x215   : > { %1128 = vrot.lane.b32.xlu1 %v1118_v4, %s6432_s14  ;;  %v5405_v4 = vpack.c.bf16 %v1786_v60, %v1785_v59  ;;  %v1777_v60 = vld [vmem:[%s6424_s10 + $0x50] sm:$0xff] }
 0x216   : > { %1130 = vrot.lane.b32.xlu0 %v1119_v5, %s6432_s14  ;;  %v1770_v5 = vld [vmem:[%s6424_s10 + $0x18] sm:$0xff] }
 0x217   : > { %v5411_v9 = vpack.c.bf16 %v1770_v5, %v1769_v62  ;;  %4548 = vmatprep.subr.bf16.mxu0 %v5405_v4  ;;  %v1778_v62 = vld [vmem:[%s6424_s10 + $0x58] sm:$0xff]  ;;  %v1795_v5 = vld [vmem:[%s6424_s10 + $0xe0] sm:$0xff] }
 0x219   : > { %1126 = vrot.lane.b32.xlu1 %v5291_v6, %s6432_s14  ;;  %4550 = vmatpush3.bf16.msra.mxu0 %v5411_v9  ;;  %s6556_s14 = smov 1  }
 0x21a   : > { %1336 = vrot.lane.b32.xlu0 %v1326_v11, %s6430_s25  ;;  %v1787_v11 = vld [vmem:[%s6424_s10 + $0xa0] sm:$0xff] }
 0x21d   : > { %1338 = vrot.lane.b32.xlu1 %v5303_v12, %s6430_s25 }
 0x21e   : > { %1334 = vrot.lane.b32.xlu0 %v1325_v13, %s6430_s25  ;;  %v1788_v13 = vld [vmem:[%s6424_s10 + $0xa8] sm:$0xff]  ;;  %s6555_s25 = smov 15  }
 0x221   : > { %1450 = vrot.lane.b32.xlu1 %v1440_v16, %s6504_s15  ;;  %v1771_v16 = vld [vmem:[%s6424_s10 + $0x20] sm:$0xff] }
 0x222   : > { %1452 = vrot.lane.b32.xlu0 %v5316_v15, %s6504_s15 }
 0x225   : > { %1448 = vrot.lane.b32.xlu1 %v1439_v17, %s6504_s15  ;;  %v1772_v17 = vld [vmem:[%s6424_s10 + $0x28] sm:$0xff] }
 0x226   : > { %1553 = vrot.lane.b32.xlu0 %v5244_v49, %s6434_s16 }
 0x229   : > { %1555 = vrot.lane.b32.xlu1 %v6442_v0, %s6434_s16 }
 0x22a   : > { %1551 = vrot.lane.b32.xlu0 %v5242_v48, %s6434_s16  ;;  %s6505_s16 = smov 111  }
 0x273   : > { %v791_v18 = vpop.permute.xlu1 %790 }
 0x274   : > { %v793_v19 = vpop.permute.xlu0 %792 }
 0x275   : > { %v796_v20 = vsel %vm794_vm12, %v791_v18, %v793_v19  ;;  %v3959_v19 = vld [vmem:[%s6422_s8 + $0x20] sm:$0xff] }
 0x276   : > { %805 = vmatprep.subr.mxu1 %v796_v20  ;;  %v5430_v20 = vpack.c.bf16 %v1788_v13, %v1787_v11 }
 0x277   : > { %v789_v22 = vpop.permute.xlu1 %788 }
 0x278   : > { %v795_v24 = vsel %vm794_vm12, %v789_v22, %v791_v18  ;;  %v4954_v25 = vpop.permute.xlu0 %4953  ;;  %4552 = vmatprep.subr.bf16.mxu0 %v5430_v20 }
 0x279   : > { %v4956_v26 = vunpack.i.h.bf16 %v4954_v25  ;;  %v5338_v27 = vunpack.i.l.bf16 %v4954_v25  ;;  %806 = vmatpush1.msra.mxu1 %v795_v24  ;;  %v1790_v24 = vld [vmem:[%s6424_s10 + $0xb8] sm:$0xff] }
 0x27a   : > { %3953 = vmatmul.mubr.msk.f32.vlgmr.msra.gmra.mrb[2].mxu1 %vm673_vm6, %v783_v23  ;;  %v1789_v23 = vld [vmem:[%s6424_s10 + $0xb0] sm:$0xff] }
 0x27b   : > { %v5341_v28 = vmul.f32 0.0, %v4956_v26  ;;  %v895_v30 = vpop.permute.xlu1 %894  ;;  %875 = vmatprep.mubr.f32.mxu1 %v6442_v0  ;;  %v5346_v31 = vsel %vm794_vm12, %v5338_v27, %v4956_v26  ;;  %v1657_v42 = vmul.f32 %v5338_v27, %v5242_v48  ;;  %v5441_v26 = vpack.c.bf16 %v1772_v17, %v1771_v16  ;;  %v1779_v16 = vld [vmem:[%s6424_s10 + $0x60] sm:$0xff]  ;;  %v1780_v17 = vld [vmem:[%s6424_s10 + $0x68] sm:$0xff] }
 0x27c   : > { %v897_v33 = vpop.permute.xlu0 %896  ;;  %v1658_v34 = vmul.f32 %v5346_v31, %v5244_v49 }
 0x27d   : > { %1670 = vrot.lane.b32.xlu0 %v5341_v28, %s6505_s16  ;;  %v900_v35 = vsel %vm898_vm13, %v895_v30, %v897_v33  ;;  %4554 = vmatpush3.bf16.msra.mxu0 %v5441_v26 }
 0x27e   : > { %1668 = vrot.lane.b32.xlu1 %v1658_v34, %s6505_s16  ;;  %3954 = vmatmul.mubr.msk.f32.gmra.mrb[4].mxu1 %vm673_vm6, %v784_v32  ;;  %v1774_v32 = vld [vmem:[%s6424_s10 + $0x38] sm:$0xff]  ;;  %v5454_v34 = vld [vmem:[%s6422_s8 + $0x28] sm:$0xff] }
 0x27f   : > { %909 = vmatprep.subr.mxu1 %v900_v35  ;;  %v893_v37 = vpop.permute.xlu1 %892  ;;  %973 = vmatprep.mubr.f32.mxu1 %v6442_v0  ;;  %v5457_v35 = vpack.c.bf16 %v1790_v24, %v1789_v23 }
 0x280   : > { %v899_v39 = vsel %vm898_vm13, %v893_v37, %v895_v30  ;;  %v1013_v40 = vpop.permute.xlu0 %1012  ;;  %v1773_v30 = vld [vmem:[%s6424_s10 + $0x30] sm:$0xff]  ;;  %v1792_v37 = vld [vmem:[%s6424_s10 + $0xc8] sm:$0xff] }
 0x281   : > { %460 = vperm.xlu0 %4926, %v456_v36   ;;  %910 = vmatpush1.msra.mxu1 %v899_v39  ;;  %v1791_v36 = vld [vmem:[%s6424_s10 + $0xc0] sm:$0xff] }
 0x282   : > { %1666 = vrot.lane.b32.xlu1 %v1657_v42, %s6505_s16  ;;  %3957 = vmatmul.mubr.msk.f32.vlgmr.msra.gmra.mrb[2].mxu1 %vm673_vm6, %v3955_v38  ;;  %v5472_v42 = vpack.c.bf16 %v1792_v37, %v1791_v36 }
 0x283   : > { %v1015_v57 = vpop.permute.xlu1 %1014  ;;  %979 = vmatprep.mubr.f32.mxu1 %v6442_v0  ;;  %4556 = vmatprep.subr.bf16.mxu0 %v5457_v35 }
 0x284   : > { %v1011_v63 = vpop.permute.xlu0 %1010  ;;  %v1018_v2 = vsel %vm1016_vm11, %v1013_v40, %v1015_v57 }
 0x285   : > { %v1017_v7 = vsel %vm1016_vm11, %v1011_v63, %v1013_v40  ;;  %1027 = vmatprep.subr.mxu1 %v1018_v2  ;;  %v5467_v40 = vpack.c.bf16 %v1774_v32, %v1773_v30  ;;  %v5513_v2 = vld [vmem:[%s6422_s8 + $0x38] sm:$0xff]  ;;  %v5553_v30 = vld [vmem:[%s6422_s8 + $0x48] sm:$0xff]  ;;  %v5562_v32 = vld [vmem:[%s6422_s8 + $0x50] sm:$0xff] }
 0x286   : > { %3958 = vmatmul.mubr.msk.f32.gmra.mrb[4].mxu1 %vm673_vm6, %v3956_v51  ;;  %465 = vperm.xlu1 %4957, %v457_v53   ;;  %v1794_v51 = vld [vmem:[%s6424_s10 + $0xd8] sm:$0xff]  ;;  %v5494_v53 = vpack.c.bf16 %v1776_v44, %v1775_v43  ;;  %v5580_v44 = vld [vmem:[%s6422_s8 + $0x60] sm:$0xff] }
 0x287   : > { %1028 = vmatpush1.msra.mxu1 %v1017_v7  ;;  %v1129_v18 = vpop.permute.xlu1 %1128  ;;  %1091 = vmatprep.mubr.f32.mxu1 %v6442_v0  ;;  %v1796_v7 = vld [vmem:[%s6424_s10 + $0xe8] sm:$0xff] }
 0x288   : > { %v1131_v22 = vpop.permute.xlu0 %1130  ;;  %4558 = vmatpush3.bf16.msra.mxu0 %v5467_v40  ;;  %v5527_v13 = vpack.c.bf16 %v1796_v7, %v1795_v5  ;;  %v4068_v5 = vld [vmem:[%s6424_s10 + $0x388] sm:$0xff] }
 0x289   : > { %v1134_v25 = vsel %vm1132_vm10, %v1129_v18, %v1131_v22  ;;  %4560 = vmatprep.subr.bf16.mxu0 %v5472_v42  ;;  %v5542_v22 = vpack.c.bf16 %v1780_v17, %v1779_v16  ;;  %v4052_v16 = vld [vmem:[%s6424_s10 + $0x308] sm:$0xff]  ;;  %v4069_v17 = vld [vmem:[%s6424_s10 + $0x390] sm:$0xff] }
 0x28a   : > { %3961 = vmatmul.mubr.msk.f32.vlgmr.msra.gmra.mrb[2].mxu1 %vm673_vm6, %v3959_v19  ;;  %1143 = vmatprep.subr.mxu1 %v1134_v25 }
 0x28b   : > { %v1127_v33 = vpop.permute.xlu1 %1126  ;;  %1097 = vmatprep.mubr.f32.mxu1 %v6442_v0 }
 0x28c   : > { %v1133_v38 = vsel %vm1132_vm10, %v1127_v33, %v1129_v18  ;;  %v1337_v39 = vpop.permute.xlu0 %1336  ;;  %4562 = vmatpush3.bf16.msra.mxu0 %v5494_v53  ;;  %v5539_v18 = vld [vmem:[%s6422_s8 + $0x40] sm:$0xff] }
 0x28d   : > { %1144 = vmatpush1.msra.mxu1 %v1133_v38 }
 0x28e   : > { %3962 = vmatmul.mubr.msk.f32.gmra.mrb[4].mxu1 %vm673_vm6, %v5454_v34  ;;  %1233 = vmatprep.subr.mxu1 %v5244_v49  ;;  %v1793_v49 = vld [vmem:[%s6424_s10 + $0xd0] sm:$0xff] }
 0x28f   : > { %v1339_v47 = vpop.permute.xlu1 %1338  ;;  %1207 = vmatprep.mubr.f32.mxu1 %v6442_v0  ;;  %v5499_v59 = vpack.c.bf16 %v1794_v51, %v1793_v49  ;;  %v3976_v49 = vld [vmem:[%s6422_s8 + $0x68] sm:$0xff]  ;;  %v5594_v51 = vld [vmem:[%s6422_s8 + $0x70] sm:$0xff] }
 0x290   : > { %v1335_v57 = vpop.permute.xlu0 %1334  ;;  %v1341_v63 = vsel %vm1112_vm9, %v1337_v39, %v1339_v47 }
 0x291   : > { %4564 = vmatprep.subr.bf16.mxu0 %v5499_v59  ;;  %v1340_v23 = vsel %vm1112_vm9, %v1335_v57, %v1337_v39  ;;  %v5572_v39 = vld [vmem:[%s6422_s8 + $0x58] sm:$0xff] }
 0x292   : > { %3965 = vmatmul.mubr.msk.f32.vlgmr.msra.gmra.mrb[2].mxu1 %vm673_vm6, %v5484_v50  ;;  %v5602_v57 = vld [vmem:[%s6422_s8 + $0x78] sm:$0xff] }
 0x293   : > { %1234 = vmatpush1.msra.mxu1 %v5242_v48  ;;  %1213 = vmatprep.mubr.f32.mxu1 %v6442_v0  ;;  %v1451_v11 = vpop.permute.xlu1 %1450  ;;  %v5522_v48 = vpack.c.bf16 %v1778_v62, %v1777_v60 }
 0x294   : > { %1350 = vmatprep.subr.mxu1 %v1341_v63  ;;  %v1453_v19 = vpop.permute.xlu0 %1452  ;;  %v4067_v63 = vld [vmem:[%s6424_s10 + $0x380] sm:$0xff] }
 0x295   : > { %4566 = vmatpush3.bf16.msra.mxu0 %v5522_v48  ;;  %v1455_v25 = vsel %vm996_vm8, %v1451_v11, %v1453_v19  ;;  %v4070_v19 = vld [vmem:[%s6424_s10 + $0x398] sm:$0xff] }
 0x296   : > { %3966 = vmatmul.mubr.msk.f32.gmra.mrb[4].mxu1 %vm673_vm6, %v5513_v2  ;;  %4568 = vmatprep.subr.bf16.mxu0 %v5527_v13 }
 0x297   : > { %1297 = vmatprep.mubr.f32.mxu1 %v6442_v0  ;;  %v1449_v24 = vpop.permute.xlu1 %1448 }
 0x298   : > { %v1554_v36 = vpop.permute.xlu0 %1553  ;;  %v1454_v37 = vsel %vm996_vm8, %v1449_v24, %v1451_v11  ;;  %v4051_v11 = vld [vmem:[%s6424_s10 + $0x300] sm:$0xff] }
 0x299   : > { %4570 = vmatpush3.bf16.msra.mxu0 %v5542_v22 }
 0x29a   : > { %3969 = vmatmul.mubr.msk.f32.vlgmr.msra.gmra.mrb[2].mxu1 %vm673_vm6, %v5539_v18 }
 0x29b   : > { %1351 = vmatpush1.msra.mxu1 %v1340_v23  ;;  %1303 = vmatprep.mubr.f32.mxu1 %v6442_v0  ;;  %v1556_v33 = vpop.permute.xlu1 %1555  ;;  %v5626_v23 = vpack.c.bf16 %v4068_v5, %v4067_v63  ;;  %v4055_v5 = vld [vmem:[%s6424_s10 + $0x320] sm:$0xff] }
 0x29c   : > { %1464 = vmatprep.subr.mxu1 %v1455_v25  ;;  %v1559_v38 = vsel %vm1557_vm14, %v1554_v36, %v1556_v33  ;;  %v1552_v43 = vpop.permute.xlu0 %1551  ;;  %v5631_v25 = vld [vmem:[%s6422_s8 + $0x80] sm:$0xff]  ;;  %v5633_v33 = vpack.c.bf16 %v4052_v16, %v4051_v11  ;;  %v4073_v11 = vld [vmem:[%s6424_s10 + $0x3b0] sm:$0xff]  ;;  %v4074_v16 = vld [vmem:[%s6424_s10 + $0x3b8] sm:$0xff] }
 0x29d   : > { %v1558_v47 = vsel %vm1557_vm14, %v1552_v43, %v1554_v36  ;;  %6506 = vst [vmem:[#allocation6_spill] sm:$0xff] %v5631_v25  ;;  %v4054_v43 = vld [vmem:[%s6424_s10 + $0x318] sm:$0xff] }
 0x29e   : > { %3970 = vmatmul.mubr.msk.f32.gmra.mrb[4].mxu1 %vm673_vm6, %v5553_v30  ;;  %6507 = vst [vmem:[#allocation7_spill] sm:$0xff] %v5633_v33 }
 0x29f   : > { %1414 = vmatprep.mubr.f32.mxu1 %v6442_v0 }
 0x2a2   : > { %3973 = vmatmul.mubr.msk.f32.vlgmr.msra.gmra.mrb[2].mxu1 %vm673_vm6, %v5562_v32 }
 0x2a3   : > { %1465 = vmatpush1.msra.mxu1 %v1454_v37  ;;  %1420 = vmatprep.mubr.f32.mxu1 %v6442_v0  ;;  %v5636_v37 = vpack.c.bf16 %v4070_v19, %v4069_v17  ;;  %v5683_v19 = vpack.c.bf16 %v4074_v16, %v4073_v11  ;;  %v4077_v11 = vld [vmem:[%s6424_s10 + $0x3d0] sm:$0xff]  ;;  %v4078_v16 = vld [vmem:[%s6424_s10 + $0x3d8] sm:$0xff] }
 0x2a4   : > { %1568 = vmatprep.subr.mxu1 %v1559_v38  ;;  %v4053_v38 = vld [vmem:[%s6424_s10 + $0x310] sm:$0xff] }
 0x2a5   : > { %6508 = vst [vmem:[#allocation8_spill] sm:$0xff] %v5636_v37  ;;  %6513 = vst [vmem:[#allocation13_spill] sm:$0xff] %v5683_v19 }
 0x2a6   : > { %3974 = vmatmul.mubr.msk.f32.gmra.mrb[4].mxu1 %vm673_vm6, %v5572_v39 }
 0x2a7   : > { %1528 = vmatprep.mubr.f32.mxu1 %v6442_v0 }
 0x2aa   : > { %3977 = vmatmul.mubr.msk.f32.vlgmr.msra.gmra.mrb[2].mxu1 %vm673_vm6, %v5580_v44 }
 0x2ab   : > { %1569 = vmatpush1.msra.mxu1 %v1558_v47  ;;  %1534 = vmatprep.mubr.f32.mxu1 %v6442_v0  ;;  %v4071_v47 = vld [vmem:[%s6424_s10 + $0x3a0] sm:$0xff] }
 0x2ae   : > { %3978 = vmatmul.mubr.msk.f32.gmra.mrb[4].mxu1 %vm673_vm6, %v3976_v49  ;;  %v4072_v49 = vld [vmem:[%s6424_s10 + $0x3a8] sm:$0xff] }
 0x2af   : > { %1632 = vmatprep.mubr.f32.mxu1 %v6442_v0  ;;  %v5663_v63 = vpack.c.bf16 %v4072_v49, %v4071_v47 }
 0x2b1   : > { %6511 = vst [vmem:[#allocation11_spill] sm:$0xff] %v5663_v63 }
 0x2b2   : > { %3981 = vmatmul.mubr.msk.f32.vlgmr.msra.gmra.mrb[2].mxu1 %vm673_vm6, %v5594_v51 }
 0x2b3   : > { %1638 = vmatprep.mubr.f32.mxu1 %v6442_v0 }
 0x2b6   : > { %3982 = vmatmul.mubr.msk.f32.gmra.mrb[4].mxu1 %vm673_vm6, %v5602_v57 }
 0x2b7   : > { %1746 = vmatprep.mubr.f32.mxu1 %v6442_v0 }
 0x2ef   : > { %v1671_v60 = vpop.permute.xlu0 %1670 }
 0x2f0   : > { %v1669_v62 = vpop.permute.xlu1 %1668 }
 0x2f1   : > { %v1673_v7 = vsel %vm775_vm7, %v1669_v62, %v1671_v60  ;;  %v5657_v60 = vld [vmem:[%s6422_s8 + $0x88] sm:$0xff] }
 0x2f2   : > { %1682 = vmatprep.subr.mxu1 %v1673_v7  ;;  %6509 = vst [vmem:[#allocation9_spill] sm:$0xff] %v5657_v60  ;;  %v4056_v7 = vld [vmem:[%s6424_s10 + $0x328] sm:$0xff] }
 0x2f3   : > { %v5680_v17 = vpack.c.bf16 %v4056_v7, %v4055_v5  ;;  %v4059_v5 = vld [vmem:[%s6424_s10 + $0x340] sm:$0xff]  ;;  %v4060_v7 = vld [vmem:[%s6424_s10 + $0x348] sm:$0xff] }
 0x2f4   : > { %v1667_v24 = vpop.permute.xlu1 %1666 }
 0x2f5   : > { %v1672_v36 = vsel %vm775_vm7, %v1667_v24, %v1669_v62  ;;  %v5660_v62 = vpack.c.bf16 %v4054_v43, %v4053_v38  ;;  %6512 = vst [vmem:[#allocation12_spill] sm:$0xff] %v5680_v17  ;;  %v4057_v24 = vld [vmem:[%s6424_s10 + $0x330] sm:$0xff]  ;;  %v4075_v38 = vld [vmem:[%s6424_s10 + $0x3c0] sm:$0xff]  ;;  %v4076_v43 = vld [vmem:[%s6424_s10 + $0x3c8] sm:$0xff] }
 0x2f6   : > { %1683 = vmatpush1.msra.mxu1 %v1672_v36  ;;  %v4058_v36 = vld [vmem:[%s6424_s10 + $0x338] sm:$0xff]  ;;  %v5701_v49 = vpack.c.bf16 %v4076_v43, %v4075_v38  ;;  %v4061_v38 = vld [vmem:[%s6424_s10 + $0x350] sm:$0xff] }
 0x2f7   : > { %3985 = vmatmul.mubr.msk.f32.vlgmr.msra.gmra.mrb[2].mxu1 %vm673_vm6, %v5631_v25  ;;  %4640 = vmatprep.subr.bf16.mxu1 %v5626_v23  ;;  %6510 = vst [vmem:[#allocation10_spill] sm:$0xff] %v5660_v62  ;;  %v5698_v47 = vpack.c.bf16 %v4058_v36, %v4057_v24  ;;  %v5716_v24 = vpack.c.bf16 %v4060_v7, %v4059_v5  ;;  %v4062_v43 = vld [vmem:[%s6424_s10 + $0x358] sm:$0xff]  ;;  %v4080_v5 = vld [vmem:[%s6424_s10 + $0x3e8] sm:$0xff] }
 0x2f8   : > { %1752 = vmatprep.mubr.f32.mxu1 %v6442_v0  ;;  %4642 = vmatpush3.bf16.msra.mxu1 %v5633_v33  ;;  %6515 = vst [vmem:[#allocation15_spill] sm:$0xff] %v5701_v49  ;;  %v5719_v36 = vpack.c.bf16 %v4078_v16, %v4077_v11  ;;  %v4079_v0 = vld [vmem:[%s6424_s10 + $0x3e0] sm:$0xff]  ;;  %v5734_v7 = vpack.c.bf16 %v4062_v43, %v4061_v38  ;;  %v1797_v38 = vld [vmem:[%s6424_s10 + $0xf0] sm:$0xff]  ;;  %v3990_v25 = vld [vmem:[%s6424_s10 + $0x118] sm:$0xff] }
 0x2f9   : > { %4644 = vmatprep.subr.bf16.mxu1 %v5636_v37  ;;  %6514 = vst [vmem:[#allocation14_spill] sm:$0xff] %v5698_v47  ;;  %6516 = vst [vmem:[#allocation16_spill] sm:$0xff] %v5716_v24  ;;  %v5737_v11 = vpack.c.bf16 %v4080_v5, %v4079_v0  ;;  %v4063_v16 = vld [vmem:[%s6424_s10 + $0x360] sm:$0xff]  ;;  %v1798_v0 = vld [vmem:[%s6424_s10 + $0xf8] sm:$0xff] }
 0x2fa   : > { %6517 = vst [vmem:[#allocation17_spill] sm:$0xff] %v5719_v36  ;;  %6518 = vst [vmem:[#allocation18_spill] sm:$0xff] %v5734_v7  ;;  %v5756_v43 = vpack.c.bf16 %v1798_v0, %v1797_v38  ;;  %v1781_v5 = vld [vmem:[%s6424_s10 + $0x70] sm:$0xff]  ;;  %v4066_v0 = vld [vmem:[%s6424_s10 + $0x378] sm:$0xff] }
 0x2fb   : > { %3986 = vmatmul.mubr.msk.f32.gmra.mrb[4].mxu1 %vm673_vm6, %v5657_v60  ;;  %6519 = vst [vmem:[#allocation19_spill] sm:$0xff] %v5737_v11  ;;  %v4065_v38 = vld [vmem:[%s6424_s10 + $0x370] sm:$0xff] }
 0x2fc   : > { %4646 = vmatpush3.bf16.msra.mxu1 %v5660_v62  ;;  %4572 = vmatprep.subr.bf16.mxu0 %v5756_v43  ;;  %v3989_v33 = vld [vmem:[%s6424_s10 + $0x110] sm:$0xff] }
 0x2fd   : > { %4648 = vmatprep.subr.bf16.mxu1 %v5663_v63 }
 0x300   : > { %4650 = vmatpush3.bf16.msra.mxu1 %v5680_v17 }
 0x301   : > { %4652 = vmatprep.subr.bf16.mxu1 %v5683_v19  ;;  %v3987_v19 = vld [vmem:[%s6424_s10 + $0x100] sm:$0xff] }
 0x304   : > { %4654 = vmatpush3.bf16.msra.mxu1 %v5698_v47 }
 0x305   : > { %4656 = vmatprep.subr.bf16.mxu1 %v5701_v49  ;;  %v4064_v49 = vld [vmem:[%s6424_s10 + $0x368] sm:$0xff] }
 0x306   : > { %v5747_v47 = vpack.c.bf16 %v4064_v49, %v4063_v16  ;;  %v1782_v49 = vld [vmem:[%s6424_s10 + $0x78] sm:$0xff]  ;;  %v4081_v16 = vld [vmem:[%s6424_s10 + $0x3f0] sm:$0xff] }
 0x308   : > { %4658 = vmatpush3.bf16.msra.mxu1 %v5716_v24  ;;  %6520 = vst [vmem:[#allocation20_spill] sm:$0xff] %v5747_v47 }
 0x309   : > { %4660 = vmatprep.subr.bf16.mxu1 %v5719_v36  ;;  %v5781_v36 = vpack.c.bf16 %v4066_v0, %v4065_v38 }
 0x30b   : > { %6522 = vst [vmem:[#allocation22_spill] sm:$0xff] %v5781_v36 }
 0x30c   : > { %4662 = vmatpush3.bf16.msra.mxu1 %v5734_v7 }
 0x30d   : > { %4664 = vmatprep.subr.bf16.mxu1 %v5737_v11  ;;  %v5767_v11 = vpack.c.bf16 %v1782_v49, %v1781_v5  ;;  %v4003_v5 = vld [vmem:[%s6424_s10 + $0x180] sm:$0xff]  ;;  %v4004_v49 = vld [vmem:[%s6424_s10 + $0x188] sm:$0xff] }
 0x30e   : > { %v5791_v24 = vpack.c.bf16 %v4004_v49, %v4003_v5  ;;  %v5805_v49 = vpop.permute.xlu1 %465 }
 0x30f   : > { %4574 = vmatpush3.bf16.msra.mxu0 %v5767_v11  ;;  %6524 = vst [vmem:[#allocation24_spill] sm:$0xff] %v5805_v49 }
 0x310   : > { %4666 = vmatpush3.bf16.msra.mxu1 %v5747_v47  ;;  %v4082_v47 = vld [vmem:[%s6424_s10 + $0x3f8] sm:$0xff]  ;;  %4576 = vmatprep.subr.bf16.mxu0 %v5791_v24 }
 0x311   : > { %v5779_v7 = vpack.c.bf16 %v4082_v47, %v4081_v16  ;;  %v5795_v47 = vpop.permute.xlu0 %460 }
 0x312   : > { %6523 = vst [vmem:[#allocation23_spill] sm:$0xff] %v5795_v47 }
 0x313   : > { %6521 = vst [vmem:[#allocation21_spill] sm:$0xff] %v5779_v7  ;;  %4668 = vmatprep.subr.bf16.mxu1 %v5779_v7  ;;  %v3988_v7 = vld [vmem:[%s6424_s10 + $0x108] sm:$0xff] }
 0x314   : > { %4670 = vmatpush3.bf16.msra.mxu1 %v5781_v36  ;;  %v4005_v36 = vld [vmem:[%s6424_s10 + $0x190] sm:$0xff]  ;;  %v5815_v62 = vpack.c.bf16 %v3988_v7, %v3987_v19  ;;  %v4008_v19 = vld [vmem:[%s6424_s10 + $0x1a8] sm:$0xff]  ;;  %v5842_v7 = vpack.c.bf16 %v3990_v25, %v3989_v33  ;;  %v4010_v33 = vld [vmem:[%s6424_s10 + $0x1b8] sm:$0xff] }
 0x315   : > { %v4009_v25 = vld [vmem:[%s6424_s10 + $0x1b0] sm:$0xff] }
 0x316   : > { %6525 = vst [vmem:[#allocation25_spill] sm:$0xff] %v5815_v62  ;;  %6527 = vst [vmem:[#allocation27_spill] sm:$0xff] %v5842_v7 }
 0x3ca   : > { %v1748_v16 = vpop.f32.mrb[2].mxu1 }
 0x3cb   : > { %v4799_v38 = vadd.f32 %v1748_v16, %v5795_v47  ;;  %v1750_v0 = vpop.f32.mrb[3].mxu1  ;;  %v4006_v16 = vld [vmem:[%s6424_s10 + $0x198] sm:$0xff] }
 0x3cc   : > { %v4800_v5 = vadd.f32 %v1750_v0, %v5795_v47  ;;  %v5820_v47 = vpack.c.bf16 %v4006_v16, %v4005_v36 }
 0x3cd   : > { %v5817_v60 = vmax.f32 %v4799_v38, 0.0 }
 0x3ce   : > { %v5813_v17 = vmax.f32 %v4800_v5, 0.0  ;;  %v1754_v63 = vpop.f32.mrb[4].mxu1  ;;  %6526 = vst [vmem:[#allocation26_spill] sm:$0xff] %v5820_v47 }
 0x3cf   : > { %v4801_v37 = vadd.f32 %v1754_v63, %v5805_v49  ;;  %v1756_v0 = vpop.f32.mrb[5].mxu1  ;;  %v4007_v63 = vld [vmem:[%s6424_s10 + $0x1a0] sm:$0xff] }
 0x3d0   : > { %v4802_v5 = vadd.f32 %v1756_v0, %v5805_v49  ;;  %1863 = vmatprep.mubr.f32.mxu0 %v5813_v17  ;;  %2191 = vmatprep.mubr.f32.mxu1 %v5813_v17  ;;  %v5847_v16 = vpack.c.bf16 %v4008_v19, %v4007_v63  ;;  %v3991_v0 = vld [vmem:[%s6424_s10 + $0x120] sm:$0xff]  ;;  %v3992_v49 = vld [vmem:[%s6424_s10 + $0x128] sm:$0xff]  ;;  %v3993_v63 = vld [vmem:[%s6424_s10 + $0x130] sm:$0xff] }
 0x3d1   : > { %1864 = vmatmul.mubr.f32.vlgmr.msra.gmra.mrb[2].mxu0 %v5817_v60  ;;  %2192 = vmatmul.mubr.f32.vlgmr.msra.gmra.mrb[6].mxu1 %v5817_v60  ;;  %v5844_v38 = vmax.f32 %v4801_v37, 0.0  ;;  %v5867_v37 = vpack.c.bf16 %v3992_v49, %v3991_v0  ;;  %v3994_v19 = vld [vmem:[%s6424_s10 + $0x138] sm:$0xff]  ;;  %v4012_v49 = vld [vmem:[%s6424_s10 + $0x1c8] sm:$0xff] }
 0x3d2   : > { %v5839_v36 = vmax.f32 %v4802_v5, 0.0  ;;  %4578 = vmatpush3.bf16.msra.mxu0 %v5815_v62  ;;  %6528 = vst [vmem:[#allocation28_spill] sm:$0xff] %v5847_v16  ;;  %v5870_v5 = vpack.c.bf16 %v4010_v33, %v4009_v25  ;;  %v5886_v0 = vpack.c.bf16 %v3994_v19, %v3993_v63  ;;  %v3995_v33 = vld [vmem:[%s6424_s10 + $0x140] sm:$0xff]  ;;  %v4013_v62 = vld [vmem:[%s6424_s10 + $0x1d0] sm:$0xff]  ;;  %v4014_v63 = vld [vmem:[%s6424_s10 + $0x1d8] sm:$0xff] }
 0x3d3   : > { %4580 = vmatprep.subr.bf16.mxu0 %v5820_v47  ;;  %6529 = vst [vmem:[#allocation29_spill] sm:$0xff] %v5867_v37  ;;  %v6531_v47 = vmov 0.0   ;;  %v5907_v19 = vpack.c.bf16 %v4014_v63, %v4013_v62  ;;  %v3999_v63 = vld [vmem:[%s6424_s10 + $0x160] sm:$0xff] }
 0x3d4   : > { %1868 = vmatprep.mubr.f32.mxu0 %v5839_v36  ;;  %2196 = vmatprep.mubr.f32.mxu1 %v5839_v36  ;;  %6530 = vst [vmem:[#allocation30_spill] sm:$0xff] %v5870_v5  ;;  %6532 = vst [vmem:[#allocation31_spill] sm:$0xff] %v5886_v0 }
 0x3d5   : > { %1869 = vmatmul.mubr.f32.gmra.mrb[4].mxu0 %v5844_v38  ;;  %2197 = vmatmul.mubr.f32.gmra.mrb[8].mxu1 %v5844_v38  ;;  %6535 = vst [vmem:[#allocation34_spill] sm:$0xff] %v5907_v19 }
 0x3d6   : > { %4582 = vmatpush3.bf16.msra.mxu0 %v5842_v7  ;;  %1971 = vmatprep.mubr.f32.mxu0 %v5813_v17  ;;  %v4011_v7 = vld [vmem:[%s6424_s10 + $0x1c0] sm:$0xff] }
 0x3d7   : > { %4584 = vmatprep.subr.bf16.mxu0 %v5847_v16  ;;  %2433 = vmatprep.mubr.f32.mxu1 %v6531_v47  ;;  %v5889_v25 = vpack.c.bf16 %v4012_v49, %v4011_v7  ;;  %v3996_v16 = vld [vmem:[%s6424_s10 + $0x148] sm:$0xff]  ;;  %v3997_v49 = vld [vmem:[%s6424_s10 + $0x150] sm:$0xff] }
 0x3d8   : > { %v5904_v7 = vpack.c.bf16 %v3996_v16, %v3995_v33  ;;  %v4016_v16 = vld [vmem:[%s6424_s10 + $0x1e8] sm:$0xff] }
 0x3d9   : > { %6533 = vst [vmem:[#allocation32_spill] sm:$0xff] %v5889_v25 }
 0x3da   : > { %4586 = vmatpush3.bf16.msra.mxu0 %v5867_v37  ;;  %6534 = vst [vmem:[#allocation33_spill] sm:$0xff] %v5904_v7  ;;  %v4015_v37 = vld [vmem:[%s6424_s10 + $0x1e0] sm:$0xff] }
 0x3db   : > { %4588 = vmatprep.subr.bf16.mxu0 %v5870_v5  ;;  %v3998_v5 = vld [vmem:[%s6424_s10 + $0x158] sm:$0xff]  ;;  %v5925_v33 = vpack.c.bf16 %v4016_v16, %v4015_v37  ;;  %v4001_v16 = vld [vmem:[%s6424_s10 + $0x170] sm:$0xff] }
 0x3dc   : > { %v5922_v62 = vpack.c.bf16 %v3998_v5, %v3997_v49  ;;  %v4018_v5 = vld [vmem:[%s6424_s10 + $0x1f8] sm:$0xff] }
 0x3dd   : > { %6537 = vst [vmem:[#allocation36_spill] sm:$0xff] %v5925_v33 }
 0x3de   : > { %4590 = vmatpush3.bf16.msra.mxu0 %v5886_v0  ;;  %6536 = vst [vmem:[#allocation35_spill] sm:$0xff] %v5922_v62  ;;  %v4017_v0 = vld [vmem:[%s6424_s10 + $0x1f0] sm:$0xff] }
 0x3df   : > { %4592 = vmatprep.subr.bf16.mxu0 %v5889_v25  ;;  %v4000_v25 = vld [vmem:[%s6424_s10 + $0x168] sm:$0xff]  ;;  %v5943_v49 = vpack.c.bf16 %v4018_v5, %v4017_v0  ;;  %v4019_v5 = vld [vmem:[%s6424_s10 + $0x200] sm:$0xff] }
 0x3e0   : > { %v5940_v37 = vpack.c.bf16 %v4000_v25, %v3999_v63  ;;  %v4036_v25 = vld [vmem:[%s6424_s10 + $0x288] sm:$0xff] }
 0x3e1   : > { %6539 = vst [vmem:[#allocation38_spill] sm:$0xff] %v5943_v49 }
 0x3e2   : > { %4594 = vmatpush3.bf16.msra.mxu0 %v5904_v7  ;;  %6538 = vst [vmem:[#allocation37_spill] sm:$0xff] %v5940_v37  ;;  %v4035_v7 = vld [vmem:[%s6424_s10 + $0x280] sm:$0xff] }
 0x3e3   : > { %4596 = vmatprep.subr.bf16.mxu0 %v5907_v19  ;;  %v4002_v19 = vld [vmem:[%s6424_s10 + $0x178] sm:$0xff]  ;;  %v5961_v63 = vpack.c.bf16 %v4036_v25, %v4035_v7  ;;  %v4021_v25 = vld [vmem:[%s6424_s10 + $0x210] sm:$0xff] }
 0x3e4   : > { %v5958_v0 = vpack.c.bf16 %v4002_v19, %v4001_v16  ;;  %v4038_v19 = vld [vmem:[%s6424_s10 + $0x298] sm:$0xff] }
 0x3e5   : > { %6541 = vst [vmem:[#allocation40_spill] sm:$0xff] %v5961_v63 }
 0x3e6   : > { %4598 = vmatpush3.bf16.msra.mxu0 %v5922_v62  ;;  %6540 = vst [vmem:[#allocation39_spill] sm:$0xff] %v5958_v0  ;;  %v4037_v62 = vld [vmem:[%s6424_s10 + $0x290] sm:$0xff] }
 0x3e7   : > { %4600 = vmatprep.subr.bf16.mxu0 %v5925_v33  ;;  %v4020_v33 = vld [vmem:[%s6424_s10 + $0x208] sm:$0xff]  ;;  %v5979_v16 = vpack.c.bf16 %v4038_v19, %v4037_v62  ;;  %v4023_v19 = vld [vmem:[%s6424_s10 + $0x220] sm:$0xff] }
 0x3e8   : > { %v5976_v7 = vpack.c.bf16 %v4020_v33, %v4019_v5  ;;  %v4040_v33 = vld [vmem:[%s6424_s10 + $0x2a8] sm:$0xff] }
 0x3e9   : > { %6543 = vst [vmem:[#allocation42_spill] sm:$0xff] %v5979_v16 }
 0x3ea   : > { %4602 = vmatpush3.bf16.msra.mxu0 %v5940_v37  ;;  %6542 = vst [vmem:[#allocation41_spill] sm:$0xff] %v5976_v7  ;;  %v4039_v37 = vld [vmem:[%s6424_s10 + $0x2a0] sm:$0xff] }
 0x3eb   : > { %4604 = vmatprep.subr.bf16.mxu0 %v5943_v49  ;;  %v4022_v49 = vld [vmem:[%s6424_s10 + $0x218] sm:$0xff]  ;;  %v5999_v5 = vpack.c.bf16 %v4040_v33, %v4039_v37  ;;  %v4025_v33 = vld [vmem:[%s6424_s10 + $0x230] sm:$0xff] }
 0x3ec   : > { %v5996_v62 = vpack.c.bf16 %v4022_v49, %v4021_v25  ;;  %v4042_v49 = vld [vmem:[%s6424_s10 + $0x2b8] sm:$0xff] }
 0x3ed   : > { %6545 = vst [vmem:[#allocation44_spill] sm:$0xff] %v5999_v5 }
 0x3ee   : > { %4606 = vmatpush3.bf16.msra.mxu0 %v5958_v0  ;;  %6544 = vst [vmem:[#allocation43_spill] sm:$0xff] %v5996_v62  ;;  %v4041_v0 = vld [vmem:[%s6424_s10 + $0x2b0] sm:$0xff] }
 0x3ef   : > { %4608 = vmatprep.subr.bf16.mxu0 %v5961_v63  ;;  %v4024_v63 = vld [vmem:[%s6424_s10 + $0x228] sm:$0xff]  ;;  %v6019_v25 = vpack.c.bf16 %v4042_v49, %v4041_v0 }
 0x3f0   : > { %v6016_v37 = vpack.c.bf16 %v4024_v63, %v4023_v19  ;;  %v4027_v19 = vld [vmem:[%s6424_s10 + $0x240] sm:$0xff]  ;;  %v4028_v49 = vld [vmem:[%s6424_s10 + $0x248] sm:$0xff] }
 0x3f1   : > { %1972 = vmatmul.mubr.f32.vlgmr.msra.gmra.mrb[6].mxu0 %v5817_v60  ;;  %6547 = vst [vmem:[#allocation46_spill] sm:$0xff] %v6019_v25 }
 0x3f2   : > { %1976 = vmatprep.mubr.f32.mxu0 %v5839_v36  ;;  %4610 = vmatpush3.bf16.msra.mxu0 %v5976_v7  ;;  %6546 = vst [vmem:[#allocation45_spill] sm:$0xff] %v6016_v37 }
 0x3f3   : > { %4612 = vmatprep.subr.bf16.mxu0 %v5979_v16  ;;  %v4026_v16 = vld [vmem:[%s6424_s10 + $0x238] sm:$0xff] }
 0x3f4   : > { %v6034_v0 = vpack.c.bf16 %v4026_v16, %v4025_v33  ;;  %v4046_v16 = vld [vmem:[%s6424_s10 + $0x2d8] sm:$0xff] }
 0x3f5   : > { %1977 = vmatmul.mubr.f32.gmra.mrb[8].mxu0 %v5844_v38 }
 0x3f6   : > { %4614 = vmatpush3.bf16.msra.mxu0 %v5996_v62  ;;  %2081 = vmatprep.mubr.f32.mxu0 %v5813_v17  ;;  %v4043_v62 = vld [vmem:[%s6424_s10 + $0x2c0] sm:$0xff]  ;;  %v4044_v17 = vld [vmem:[%s6424_s10 + $0x2c8] sm:$0xff]  ;;  %6548 = vst [vmem:[#allocation47_spill] sm:$0xff] %v6034_v0 }
 0x3f7   : > { %4616 = vmatprep.subr.bf16.mxu0 %v5999_v5  ;;  %v6037_v63 = vpack.c.bf16 %v4044_v17, %v4043_v62  ;;  %v4045_v5 = vld [vmem:[%s6424_s10 + $0x2d0] sm:$0xff]  ;;  %v6052_v62 = vpack.c.bf16 %v4028_v49, %v4027_v19  ;;  %v4048_v19 = vld [vmem:[%s6424_s10 + $0x2e8] sm:$0xff] }
 0x3f8   : > { %v6055_v33 = vpack.c.bf16 %v4046_v16, %v4045_v5  ;;  %v4029_v17 = vld [vmem:[%s6424_s10 + $0x250] sm:$0xff]  ;;  %v4031_v16 = vld [vmem:[%s6424_s10 + $0x260] sm:$0xff] }
 0x3f9   : > { %6549 = vst [vmem:[#allocation48_spill] sm:$0xff] %v6037_v63  ;;  %6550 = vst [vmem:[#allocation49_spill] sm:$0xff] %v6052_v62 }
 0x3fa   : > { %4618 = vmatpush3.bf16.msra.mxu0 %v6016_v37  ;;  %6551 = vst [vmem:[#allocation50_spill] sm:$0xff] %v6055_v33  ;;  %v4047_v37 = vld [vmem:[%s6424_s10 + $0x2e0] sm:$0xff] }
 0x3fb   : > { %4620 = vmatprep.subr.bf16.mxu0 %v6019_v25  ;;  %v4030_v25 = vld [vmem:[%s6424_s10 + $0x258] sm:$0xff]  ;;  %v6073_v49 = vpack.c.bf16 %v4048_v19, %v4047_v37  ;;  %v4033_v19 = vld [vmem:[%s6424_s10 + $0x270] sm:$0xff] }
 0x3fc   : > { %v6070_v5 = vpack.c.bf16 %v4030_v25, %v4029_v17  ;;  %v4050_v25 = vld [vmem:[%s6424_s10 + $0x2f8] sm:$0xff] }
 0x3fe   : > { %4622 = vmatpush3.bf16.msra.mxu0 %v6034_v0  ;;  %6552 = vst [vmem:[#allocation51_spill] sm:$0xff] %v6070_v5  ;;  %v4049_v0 = vld [vmem:[%s6424_s10 + $0x2f0] sm:$0xff] }
 0x3ff   : > { %4624 = vmatprep.subr.bf16.mxu0 %v6037_v63  ;;  %v4032_v63 = vld [vmem:[%s6424_s10 + $0x268] sm:$0xff]  ;;  %v6091_v17 = vpack.c.bf16 %v4050_v25, %v4049_v0 }
 0x400   : > { %v6088_v37 = vpack.c.bf16 %v4032_v63, %v4031_v16  ;;  %v4083_v63 = vld [vmem:[%s5184_s24 + $0x8] sm:$0xff] }
 0x401   : > { %v2289_v0 = vcombine.high %v4083_v63, %v4083_v63 }
 0x402   : > { %4626 = vmatpush3.bf16.msra.mxu0 %v6052_v62  ;;  %v4084_v62 = vld [vmem:[%s5189_s12 + $0x8] sm:$0xff]  ;;  %s6557_s12 = smov 127  }
 0x403   : > { %4628 = vmatprep.subr.bf16.mxu0 %v6055_v33  ;;  %v4034_v33 = vld [vmem:[%s6424_s10 + $0x278] sm:$0xff] }
 0x404   : > { %v6101_v7 = vpack.c.bf16 %v4034_v33, %v4033_v19  ;;  %v4978_v33 = vld [vmem:[%s6418_s4] sm:$0xff] }
 0x406   : > { %4630 = vmatpush3.bf16.msra.mxu0 %v6070_v5  ;;  %v2212_v5 = vcombine.high %v4084_v62, %v4084_v62 }
 0x407   : > { %4632 = vmatprep.subr.bf16.mxu0 %v6073_v49 }
 0x40a   : > { %4634 = vmatpush3.bf16.msra.mxu0 %v6088_v37 }
 0x40b   : > { %4636 = vmatprep.subr.bf16.mxu0 %v6091_v17 }
 0x40e   : > { %4638 = vmatpush3.bf16.msra.mxu0 %v6101_v7 }
 0x40f   : > { %4085 = vmatprep.subr.msk.mxu0 %vm513_vm0, %v2212_v5 }
 0x411   : > { %2082 = vmatmul.mubr.f32.vlgmr.msra.gmra.mrb[10].mxu0 %v5817_v60  ;;  %v4979_v60 = vld [vmem:[%s6417_s3] sm:$0xff] }
 0x412   : > { %2086 = vmatprep.mubr.f32.mxu0 %v5839_v36  ;;  %4086 = vmatpush1.msk.msra.mxu0 %vm513_vm0, %v4084_v62 }
 0x413   : > { %4088 = vmatprep.subr.msk.mxu0 %vm513_vm0, %v2289_v0 }
 0x415   : > { %2087 = vmatmul.mubr.f32.gmra.mrb[12].mxu0 %v5844_v38 }
 0x416   : > { %2281 = vmatprep.mubr.f32.mxu0 %v6531_v47 }
 0x419   : > { %4087 = vmatmul.mubr.msk.f32.vlgmr.msra.gmra.mrb[14].mxu0 %vm509_vm1, %v4978_v33 }
 0x41a   : > { %4089 = vmatpush1.msk.msra.mxu0 %vm513_vm0, %v4083_v63  ;;  %2358 = vmatprep.mubr.f32.mxu0 %v6531_v47 }
 0x41b   : > { %4672 = vmatprep.subr.bf16.mxu0 %v5374_v45 }
 0x421   : > { %4090 = vmatmul.mubr.msk.f32.vlgmr.msra.gmra.mrb[14].mxu0 %vm509_vm1, %v4979_v60 }
 0x422   : > { %4674 = vmatpush3.bf16.msra.mxu0 %v5390_v55 }
 0x423   : > { %4676 = vmatprep.subr.bf16.mxu0 %v5405_v4 }
 0x426   : > { %4678 = vmatpush3.bf16.msra.mxu0 %v5411_v9 }
 0x427   : > { %4680 = vmatprep.subr.bf16.mxu0 %v5430_v20 }
 0x42a   : > { %4682 = vmatpush3.bf16.msra.mxu0 %v5441_v26 }
 0x42b   : > { %4684 = vmatprep.subr.bf16.mxu0 %v5457_v35 }
 0x42e   : > { %4686 = vmatpush3.bf16.msra.mxu0 %v5467_v40 }
 0x42f   : > { %4688 = vmatprep.subr.bf16.mxu0 %v5472_v42 }
 0x432   : > { %4690 = vmatpush3.bf16.msra.mxu0 %v5494_v53 }
 0x433   : > { %4692 = vmatprep.subr.bf16.mxu0 %v5499_v59 }
 0x436   : > { %4694 = vmatpush3.bf16.msra.mxu0 %v5522_v48 }
 0x437   : > { %4696 = vmatprep.subr.bf16.mxu0 %v5527_v13 }
 0x43a   : > { %4698 = vmatpush3.bf16.msra.mxu0 %v5542_v22 }
 0x43b   : > { %4700 = vmatprep.subr.bf16.mxu0 %v5756_v43 }
 0x43e   : > { %4702 = vmatpush3.bf16.msra.mxu0 %v5767_v11 }
 0x43f   : > { %4704 = vmatprep.subr.bf16.mxu0 %v5791_v24 }
 0x4a4   : > { %v4271_v45 = vpop.f32.mrb[2].mxu0  ;;  %v4385_v55 = vpop.f32.mrb[6].mxu1 }
 0x4a5   : > { %v4272_v4 = vpop.f32.mrb[3].mxu0  ;;  %v4386_v9 = vpop.f32.mrb[7].mxu1 }
 0x4a6   : > { %v4273_v20 = vadd.f32 %v4272_v4, %v4271_v45  ;;  %v4387_v26 = vadd.f32 %v4386_v9, %v4385_v55 }
 0x4a8   : > { %v4274_v35 = vpop.f32.mrb[4].mxu0  ;;  %v4388_v40 = vpop.f32.mrb[8].mxu1 }
 0x4a9   : > { %v4275_v42 = vpop.f32.mrb[5].mxu0  ;;  %v4389_v53 = vpop.f32.mrb[9].mxu1 }
 0x4aa   : > { %v4276_v59 = vadd.f32 %v4275_v42, %v4274_v35  ;;  %v4390_v48 = vadd.f32 %v4389_v53, %v4388_v40 }
 0x4c4   : > { %v4309_v13 = vpop.f32.mrb[6].mxu0 }
 0x4c5   : > { %v4310_v22 = vpop.f32.mrb[7].mxu0 }
 0x4c6   : > { %v4311_v43 = vadd.f32 %v4310_v22, %v4309_v13 }
 0x4c8   : > { %v1982_v11 = vmax.f32 %v4273_v20, %v4311_v43  ;;  %v4312_v36 = vpop.f32.mrb[8].mxu0 }
 0x4c9   : > { %v4313_v24 = vpop.f32.mrb[9].mxu0 }
 0x4ca   : > { %v4314_v38 = vadd.f32 %v4313_v24, %v4312_v36 }
 0x4cc   : > { %v1983_v62 = vmax.f32 %v4276_v59, %v4314_v38  ;;  %v4094_v38 = vld [vmem:[%s5232_s30 + $0x10] sm:$0xff] }
 0x4e4   : > { %v4347_v5 = vpop.f32.mrb[10].mxu0 }
 0x4e5   : > { %v4348_v16 = vpop.f32.mrb[11].mxu0 }
 0x4e6   : > { %v4349_v25 = vadd.f32 %v4348_v16, %v4347_v5 }
 0x4e8   : > { %v2092_v19 = vmax.f32 %v1982_v11, %v4349_v25  ;;  %v4350_v63 = vpop.f32.mrb[12].mxu0 }
 0x4e9   : > { %v4351_v0 = vpop.f32.mrb[13].mxu0 }
 0x4ea   : > { %v2202_v33 = vmax.f32 %v2092_v19, %v4387_v26  ;;  %v4352_v60 = vadd.f32 %v4351_v0, %v4350_v63  ;;  %v4980_v26 = vld [vmem:[%s6420_s6] sm:$0xff] }
 0x4ec   : > { %2205 = vst.msk [vmem:[%s6143_s13] sm:$0xff] %vm2204_vm15, %v2202_v33  ;;  %v2093_v45 = vmax.f32 %v1983_v62, %v4352_v60  ;;  %v4095_v62 = vld [vmem:[%s5232_s30 + $0x18] sm:$0xff]  ;;  %s6554_s30 = smov 16  }
 0x4ee   : > { %v2203_v55 = vmax.f32 %v2093_v45, %v4390_v48 }
 0x4f0   : > { %2206 = vst.msk [vmem:[%s6143_s13 + $0x8] sm:$0xff] %vm2204_vm15, %v2203_v55 }
 0x4f4   : > { %v2360_v4 = vpop.f32.mrb[14].mxu0 }
 0x4f5   : > { %v2365_v9 = vadd.f32 %v2360_v4, %v5215_v21  ;;  %v2362_v20 = vpop.f32.mrb[15].mxu0 }
 0x4f6   : > { %v2366_v35 = vadd.f32 %v2362_v20, %v5215_v21  ;;  %v4981_v20 = vld [vmem:[%s6422_s8 + $0x10] sm:$0xff] }
 0x4f7   : > { %v2367_v42 = vmax.f32 %v2365_v9, 0.0 }
 0x4f8   : > { %v2368_v40 = vmax.f32 %v2366_v35, 0.0 }
 0x4fa   : > { %2369 = vmatprep.subr.mxu1 %v2368_v40 }
 0x4fb   : > { %2370 = vmatpush1.msra.mxu1 %v2367_v42 }
 0x4fc   : > { %4091 = vmatmul.mubr.msk.f32.vlgmr.msra.gmra.mrb[10].mxu1 %vm673_vm6, %v4980_v26  ;;  %v4982_v26 = vld [vmem:[%s6422_s8 + $0x18] sm:$0xff] }
 0x4fd   : > { %2550 = vmatprep.mubr.f32.mxu1 %v6531_v47 }
 0x5cf   : > { %v2435_v53 = vpop.f32.mrb[10].mxu1 }
 0x5d0   : > { %v2436_v59 = vadd.f32 %v2435_v53, %v5224_v29  ;;  %v2437_v48 = vpop.f32.mrb[11].mxu1 }
 0x5d1   : > { %v2438_v21 = vadd.f32 %v2437_v48, %v5224_v29 }
 0x5d2   : > { %v4092_v13 = vmul.f32 -1.442695, %v2436_v59 }
 0x5d3   : > { %v4093_v22 = vmul.f32 -1.442695, %v2438_v21 }
 0x5d4   : > { %4970 = vpow2.f32 %v4092_v13  ;;  %v4983_v13 = vld [vmem:[%s6422_s8 + $0x20] sm:$0xff] }
 0x5d5   : > { %4972 = vpow2.f32 %v4093_v22 }
 0x5de   : > { %v4971_v43 = vpop.eup %4970 }
 0x5df   : > { %v4973_v11 = vpop.eup %4972  ;;  %v2446_v36 = vadd.f32 1.0, %v4971_v43 }
 0x5e0   : > { %v2447_v24 = vadd.f32 1.0, %v4973_v11 }
 0x5e1   : > { %4974 = vrcp.f32 %v2446_v36 }
 0x5e2   : > { %4976 = vrcp.f32 %v2447_v24 }
 0x5eb   : > { %v4975_v5 = vpop.eup %4974 }
 0x5ec   : > { %v4977_v16 = vpop.eup %4976  ;;  %v6160_v25 = vmul.f32 %v4975_v5, %v4094_v38 }
 0x5ed   : > { %v6162_v19 = vmul.f32 %v4977_v16, %v4095_v62 }
 0x5ee   : > { %v2463_v29 = vmul.f32 %v6160_v25, %v5240_v46  ;;  %v2670_v46 = vmul.f32 %v6160_v25, %v5263_v56  ;;  %v2971_v56 = vmul.f32 %v5282_v3, %v6160_v25  ;;  %v3283_v3 = vmul.f32 %v5338_v27, %v6160_v25 }
 0x5ef   : > { %v2464_v63 = vmul.f32 %v5234_v41, %v6162_v19  ;;  %v2671_v41 = vmul.f32 %v5254_v54, %v6162_v19  ;;  %v2776_v0 = vmul.f32 %v5267_v58, %v6162_v19  ;;  %v2972_v54 = vmul.f32 %v6162_v19, %v5296_v8 }
 0x5f0   : > { %2472 = vrot.lane.b32.xlu0 %v2463_v29, %s6553_s2  ;;  %v3076_v58 = vmul.f32 %v5299_v10, %v6160_v25 }
 0x5f1   : > { %2474 = vrot.lane.b32.xlu1 %v2464_v63, %s6553_s2  ;;  %v4119_v63 = vld [vmem:[%s6422_s8 + $0x68] sm:$0xff] }
 0x5f4   : > { %2470 = vrot.lane.b32.xlu0 %v5252_v52, %s6553_s2  ;;  %v2775_v52 = vmul.f32 %v6160_v25, %v5280_v1  ;;  %v3284_v1 = vmul.f32 %v6162_v19, %v5346_v31  ;;  %s4990_s2 = scalar_lea.vmem %s4989_s1, 1024 }
 0x5f5   : > { %2574 = vrot.lane.b32.xlu1 %v6160_v25, %s6554_s30 }
 0x5f8   : > { %2576 = vrot.lane.b32.xlu0 %v6162_v19, %s6554_s30 }
 0x5f9   : > { %2572 = vrot.lane.b32.xlu1 %v6531_v47, %s6554_s30 }
 0x5fc   : > { %2679 = vrot.lane.b32.xlu0 %v2670_v46, %s6555_s25 }
 0x5fd   : > { %2681 = vrot.lane.b32.xlu1 %v2671_v41, %s6555_s25  ;;  %v6560_v41 = vld [vmem:[#allocation7_spill] sm:$0xff] }
 0x600   : > { %2677 = vrot.lane.b32.xlu0 %v5273_v61, %s6555_s25  ;;  %v3077_v61 = vmul.f32 %v6162_v19, %v5312_v14  ;;  %v2465_v14 = vld [vmem:[%s6422_s8] sm:$0xff] }
 0x601   : > { %2784 = vrot.lane.b32.xlu1 %v2775_v52, %s6556_s14  ;;  %v6561_v52 = vld [vmem:[#allocation8_spill] sm:$0xff] }
 0x604   : > { %2786 = vrot.lane.b32.xlu0 %v2776_v0, %s6556_s14  ;;  %v6563_v0 = vld [vmem:[#allocation10_spill] sm:$0xff] }
 0x605   : > { %2782 = vrot.lane.b32.xlu1 %v5291_v6, %s6556_s14 }
 0x608   : > { %2981 = vrot.lane.b32.xlu0 %v2972_v54, %s6557_s12  ;;  %v6565_v54 = vld [vmem:[#allocation12_spill] sm:$0xff] }
 0x609   : > { %2983 = vrot.lane.b32.xlu1 %v5303_v12, %s6557_s12 }
 0x60c   : > { %2979 = vrot.lane.b32.xlu0 %v2971_v56, %s6557_s12  ;;  %v6567_v56 = vld [vmem:[#allocation14_spill] sm:$0xff] }
 0x60d   : > { %3086 = vrot.lane.b32.xlu1 %v3077_v61, %s6504_s15  ;;  %v6568_v61 = vld [vmem:[#allocation15_spill] sm:$0xff] }
 0x610   : > { %3088 = vrot.lane.b32.xlu0 %v5316_v15, %s6504_s15 }
 0x611   : > { %3084 = vrot.lane.b32.xlu1 %v3076_v58, %s6504_s15  ;;  %v6570_v58 = vld [vmem:[#allocation17_spill] sm:$0xff]  ;;  %s3844_s15 = sshll.u32 %s6143_s13, 4  ;;  %s6367_s15 = int_to_ptr.vmem [resolvable:$true] %s3844_s15 }
 0x612   : > { %p4991_p0 = scmp.lt.s32.totalorder %s6367_s15, %s4989_s1 }
 0x614   : > { %3188 = vrot.lane.b32.xlu0 %v6162_v19, %s6558_s5 }
 0x615   : > { %3190 = vrot.lane.b32.xlu1 %v6531_v47, %s6558_s5 }
 0x618   : > { %3186 = vrot.lane.b32.xlu0 %v6160_v25, %s6558_s5  ;;  %s4238_s5 = sshll.u32 %s5142_s21, 9  ;;  %s4984_s21 = scalar_lea.vmem %s6367_s15, 512 }
 0x619   : > { %3293 = vrot.lane.b32.xlu1 %v3284_v1, %s6505_s16  ;;  %v6571_v1 = vld [vmem:[#allocation18_spill] sm:$0xff]  ;;  %s6365_s7 = scalar_lea.hbm %s6425_s11, %s4238_s5  ;;  %p4985_p11 = scmp.ne.s32.totalorder %s6367_s15, %s4984_s21 }
 0x61a   : > { %p4992_p1 = scmp.lt.s32.totalorder %s4990_s2, %s4984_s21 }
 0x61b   : > { %p4986_p12 = pnand %p4985_p11, %p5159_p5 }
 0x61c   : > { %3295 = vrot.lane.b32.xlu0 %v5341_v28, %s6505_s16  ;;  %v2466_v28 = vld [vmem:[%s6422_s8 + $0x8] sm:$0xff]  ;;  %p4993_p2 = por %p4992_p1, %p4991_p0 }
 0x61d   : > { %3291 = vrot.lane.b32.xlu1 %v3283_v3, %s6505_s16  ;;  %v6572_v3 = vld [vmem:[#allocation19_spill] sm:$0xff]  ;;  %p4987_p13 = pneg %p4986_p12 }
 0x61f   : > { %p4994_p3 = pnand %p4993_p2, %p4987_p13 }
 0x662   : > { %v2473_v6 = vpop.permute.xlu0 %2472 }
 0x663   : > { %v2475_v8 = vpop.permute.xlu1 %2474 }
 0x664   : > { %v2477_v10 = vsel %vm794_vm12, %v2473_v6, %v2475_v8  ;;  %v6574_v8 = vld [vmem:[#allocation21_spill] sm:$0xff] }
 0x665   : > { %2486 = vmatprep.subr.mxu1 %v2477_v10  ;;  %v6575_v10 = vld [vmem:[#allocation22_spill] sm:$0xff] }
 0x666   : > { %v2471_v12 = vpop.permute.xlu0 %2470 }
 0x667   : > { %v2476_v15 = vsel %vm794_vm12, %v2471_v12, %v2473_v6  ;;  %v2575_v31 = vpop.permute.xlu1 %2574  ;;  %v6573_v6 = vld [vmem:[#allocation20_spill] sm:$0xff] }
 0x668   : > { %2487 = vmatpush1.msra.mxu1 %v2476_v15 }
 0x669   : > { %4096 = vmatmul.mubr.msk.f32.vlgmr.msra.gmra.mrb[12].mxu1 %vm673_vm6, %v2465_v14  ;;  %v6576_v14 = vld [vmem:[#allocation23_spill] sm:$0xff] }
 0x66a   : > { %v2577_v27 = vpop.permute.xlu0 %2576  ;;  %2556 = vmatprep.mubr.f32.mxu1 %v6531_v47 }
 0x66b   : > { %v2573_v33 = vpop.permute.xlu1 %2572  ;;  %v2579_v60 = vsel %vm898_vm13, %v2575_v31, %v2577_v27 }
 0x66c   : > { %v2578_v45 = vsel %vm898_vm13, %v2573_v33, %v2575_v31  ;;  %2588 = vmatprep.subr.mxu1 %v2579_v60 }
 0x66d   : > { %4097 = vmatmul.mubr.msk.f32.gmra.mrb[14].mxu1 %vm673_vm6, %v2466_v28 }
 0x66e   : > { %2589 = vmatpush1.msra.mxu1 %v2578_v45  ;;  %v2680_v55 = vpop.permute.xlu0 %2679  ;;  %2652 = vmatprep.mubr.f32.mxu1 %v6531_v47  ;;  %v6577_v45 = vld [vmem:[#allocation24_spill] sm:$0xff] }
 0x66f   : > { %v2682_v4 = vpop.permute.xlu1 %2681 }
 0x670   : > { %v2684_v9 = vsel %vm1016_vm11, %v2680_v55, %v2682_v4 }
 0x671   : > { %4100 = vmatmul.mubr.msk.f32.vlgmr.msra.gmra.mrb[12].mxu1 %vm673_vm6, %v4981_v20  ;;  %2693 = vmatprep.subr.mxu1 %v2684_v9 }
 0x672   : > { %v2678_v35 = vpop.permute.xlu0 %2677  ;;  %2658 = vmatprep.mubr.f32.mxu1 %v6531_v47 }
 0x673   : > { %v2683_v40 = vsel %vm1016_vm11, %v2678_v35, %v2680_v55  ;;  %v2785_v42 = vpop.permute.xlu1 %2784  ;;  %v6578_v35 = vld [vmem:[#allocation25_spill] sm:$0xff] }
 0x674   : > { %2694 = vmatpush1.msra.mxu1 %v2683_v40 }
 0x675   : > { %4101 = vmatmul.mubr.msk.f32.gmra.mrb[14].mxu1 %vm673_vm6, %v4982_v26  ;;  %v6580_v26 = vld [vmem:[#allocation27_spill] sm:$0xff] }
 0x676   : > { %v2787_v53 = vpop.permute.xlu0 %2786  ;;  %2757 = vmatprep.mubr.f32.mxu1 %v6531_v47 }
 0x677   : > { %v2783_v59 = vpop.permute.xlu1 %2782  ;;  %v2789_v48 = vsel %vm1132_vm10, %v2785_v42, %v2787_v53  ;;  %v6581_v53 = vld [vmem:[#allocation28_spill] sm:$0xff] }
 0x678   : > { %v2788_v21 = vsel %vm1132_vm10, %v2783_v59, %v2785_v42  ;;  %2798 = vmatprep.subr.mxu1 %v2789_v48  ;;  %v6579_v42 = vld [vmem:[#allocation26_spill] sm:$0xff]  ;;  %v6582_v59 = vld [vmem:[#allocation29_spill] sm:$0xff] }
 0x679   : > { %4104 = vmatmul.mubr.msk.f32.vlgmr.msra.gmra.mrb[12].mxu1 %vm673_vm6, %v4983_v13  ;;  %v6583_v48 = vld [vmem:[#allocation30_spill] sm:$0xff]  ;;  %v6585_v13 = vld [vmem:[#allocation32_spill] sm:$0xff] }
 0x67a   : > { %2799 = vmatpush1.msra.mxu1 %v2788_v21  ;;  %v2982_v22 = vpop.permute.xlu0 %2981  ;;  %2763 = vmatprep.mubr.f32.mxu1 %v6531_v47  ;;  %v6584_v21 = vld [vmem:[#allocation31_spill] sm:$0xff] }
 0x67b   : > { %2887 = vmatprep.subr.mxu1 %v6162_v19  ;;  %v2984_v43 = vpop.permute.xlu1 %2983 }
 0x67c   : > { %v2986_v36 = vsel %vm1112_vm9, %v2982_v22, %v2984_v43  ;;  %v6587_v43 = vld [vmem:[#allocation34_spill] sm:$0xff] }
 0x67d   : > { %4105 = vmatmul.mubr.msk.f32.gmra.mrb[14].mxu1 %vm673_vm6, %v5454_v34 }
 0x67e   : > { %2862 = vmatprep.mubr.f32.mxu1 %v6531_v47  ;;  %v2980_v11 = vpop.permute.xlu0 %2979 }
 0x67f   : > { %v3087_v24 = vpop.permute.xlu1 %3086  ;;  %v2985_v34 = vsel %vm1112_vm9, %v2980_v11, %v2982_v22  ;;  %v6586_v22 = vld [vmem:[#allocation33_spill] sm:$0xff]  ;;  %v6588_v11 = vld [vmem:[#allocation35_spill] sm:$0xff] }
 0x681   : > { %4108 = vmatmul.mubr.msk.f32.vlgmr.msra.gmra.mrb[12].mxu1 %vm673_vm6, %v5484_v50 }
 0x682   : > { %2888 = vmatpush1.msra.mxu1 %v6160_v25  ;;  %2868 = vmatprep.mubr.f32.mxu1 %v6531_v47  ;;  %v3089_v38 = vpop.permute.xlu0 %3088 }
 0x683   : > { %2995 = vmatprep.subr.mxu1 %v2986_v36  ;;  %v3085_v62 = vpop.permute.xlu1 %3084  ;;  %v3091_v50 = vsel %vm996_vm8, %v3087_v24, %v3089_v38  ;;  %v6589_v36 = vld [vmem:[#allocation36_spill] sm:$0xff]  ;;  %v6591_v38 = vld [vmem:[#allocation38_spill] sm:$0xff] }
 0x684   : > { %v3090_v16 = vsel %vm996_vm8, %v3085_v62, %v3087_v24  ;;  %v6590_v24 = vld [vmem:[#allocation37_spill] sm:$0xff]  ;;  %v6593_v62 = vld [vmem:[#allocation40_spill] sm:$0xff] }
 0x685   : > { %4109 = vmatmul.mubr.msk.f32.gmra.mrb[14].mxu1 %vm673_vm6, %v5513_v2 }
 0x686   : > { %2951 = vmatprep.mubr.f32.mxu1 %v6531_v47  ;;  %v3189_v5 = vpop.permute.xlu0 %3188 }
 0x687   : > { %v3191_v2 = vpop.permute.xlu1 %3190 }
 0x689   : > { %4112 = vmatmul.mubr.msk.f32.vlgmr.msra.gmra.mrb[12].mxu1 %vm673_vm6, %v5539_v18  ;;  %v3193_v18 = vsel %vm1557_vm14, %v3189_v5, %v3191_v2  ;;  %v6596_v2 = vld [vmem:[#allocation43_spill] sm:$0xff] }
 0x68a   : > { %2996 = vmatpush1.msra.mxu1 %v2985_v34  ;;  %2957 = vmatprep.mubr.f32.mxu1 %v6531_v47  ;;  %v3187_v25 = vpop.permute.xlu0 %3186  ;;  %v6592_v34 = vld [vmem:[#allocation39_spill] sm:$0xff] }
 0x68b   : > { %3100 = vmatprep.subr.mxu1 %v3091_v50  ;;  %v3294_v19 = vpop.permute.xlu1 %3293  ;;  %v3192_v29 = vsel %vm1557_vm14, %v3187_v25, %v3189_v5  ;;  %v6594_v50 = vld [vmem:[#allocation41_spill] sm:$0xff]  ;;  %v6595_v5 = vld [vmem:[#allocation42_spill] sm:$0xff] }
 0x68c   : > { %v6598_v25 = vld [vmem:[#allocation45_spill] sm:$0xff] }
 0x68d   : > { %4113 = vmatmul.mubr.msk.f32.gmra.mrb[14].mxu1 %vm673_vm6, %v5553_v30 }
 0x68e   : > { %3059 = vmatprep.mubr.f32.mxu1 %v6531_v47  ;;  %v3296_v30 = vpop.permute.xlu0 %3295 }
 0x691   : > { %4116 = vmatmul.mubr.msk.f32.vlgmr.msra.gmra.mrb[12].mxu1 %vm673_vm6, %v5562_v32  ;;  %v3298_v32 = vsel %vm775_vm7, %v3294_v19, %v3296_v30  ;;  %v6600_v30 = vld [vmem:[#allocation47_spill] sm:$0xff] }
 0x692   : > { %3101 = vmatpush1.msra.mxu1 %v3090_v16  ;;  %3065 = vmatprep.mubr.f32.mxu1 %v6531_v47  ;;  %v6597_v16 = vld [vmem:[#allocation44_spill] sm:$0xff] }
 0x693   : > { %3202 = vmatprep.subr.mxu1 %v3193_v18  ;;  %v6599_v18 = vld [vmem:[#allocation46_spill] sm:$0xff] }
 0x695   : > { %4117 = vmatmul.mubr.msk.f32.gmra.mrb[14].mxu1 %vm673_vm6, %v5572_v39  ;;  %v3292_v39 = vpop.permute.xlu1 %3291 }
 0x696   : > { %3164 = vmatprep.mubr.f32.mxu1 %v6531_v47  ;;  %v3297_v46 = vsel %vm775_vm7, %v3292_v39, %v3294_v19  ;;  %v6601_v19 = vld [vmem:[#allocation48_spill] sm:$0xff] }
 0x699   : > { %4120 = vmatmul.mubr.msk.f32.vlgmr.msra.gmra.mrb[12].mxu1 %vm673_vm6, %v5580_v44  ;;  %v6559_v44 = vld [vmem:[#allocation6_spill] sm:$0xff] }
 0x69a   : > { %3203 = vmatpush1.msra.mxu1 %v3192_v29  ;;  %3170 = vmatprep.mubr.f32.mxu1 %v6531_v47  ;;  %v6602_v29 = vld [vmem:[#allocation49_spill] sm:$0xff] }
 0x69b   : > { %3307 = vmatprep.subr.mxu1 %v3298_v32  ;;  %v6603_v32 = vld [vmem:[#allocation50_spill] sm:$0xff] }
 0x69d   : > { %4121 = vmatmul.mubr.msk.f32.gmra.mrb[14].mxu1 %vm673_vm6, %v4119_v63  ;;  %v6604_v63 = vld [vmem:[#allocation51_spill] sm:$0xff] }
 0x69e   : > { %3266 = vmatprep.mubr.f32.mxu1 %v6531_v47 }
 0x6a1   : > { %4124 = vmatmul.mubr.msk.f32.vlgmr.msra.gmra.mrb[12].mxu1 %vm673_vm6, %v5594_v51  ;;  %v6562_v51 = vld [vmem:[#allocation9_spill] sm:$0xff] }
 0x6a2   : > { %3308 = vmatpush1.msra.mxu1 %v3297_v46  ;;  %3272 = vmatprep.mubr.f32.mxu1 %v6531_v47 }
 0x6a3   : > { %4768 = vmatprep.subr.bf16.mxu1 %v5626_v23  ;;  %v6564_v23 = vld [vmem:[#allocation11_spill] sm:$0xff] }
 0x6a5   : > { %4125 = vmatmul.mubr.msk.f32.gmra.mrb[14].mxu1 %vm673_vm6, %v5602_v57  ;;  %v6566_v57 = vld [vmem:[#allocation13_spill] sm:$0xff] }
 0x6a6   : > { %3371 = vmatprep.mubr.f32.mxu1 %v6531_v47 }
 0x6a9   : > { %4128 = vmatmul.mubr.msk.f32.vlgmr.msra.gmra.mrb[12].mxu1 %vm673_vm6, %v6559_v44 }
 0x6aa   : > { %3377 = vmatprep.mubr.f32.mxu1 %v6531_v47  ;;  %4770 = vmatpush3.bf16.msra.mxu1 %v6560_v41  ;;  %v6569_v47 = vld [vmem:[#allocation16_spill] sm:$0xff] }
 0x6ab   : > { %4772 = vmatprep.subr.bf16.mxu1 %v6561_v52 }
 0x6ad   : > { %4129 = vmatmul.mubr.msk.f32.gmra.mrb[14].mxu1 %vm673_vm6, %v6562_v51 }
 0x6ae   : > { %4774 = vmatpush3.bf16.msra.mxu1 %v6563_v0 }
 0x6af   : > { %4776 = vmatprep.subr.bf16.mxu1 %v6564_v23 }
 0x6b2   : > { %4778 = vmatpush3.bf16.msra.mxu1 %v6565_v54 }
 0x6b3   : > { %4780 = vmatprep.subr.bf16.mxu1 %v6566_v57 }
 0x6b6   : > { %4782 = vmatpush3.bf16.msra.mxu1 %v6567_v56 }
 0x6b7   : > { %4784 = vmatprep.subr.bf16.mxu1 %v6568_v61 }
 0x6ba   : > { %4786 = vmatpush3.bf16.msra.mxu1 %v6569_v47 }
 0x6bb   : > { %4788 = vmatprep.subr.bf16.mxu1 %v6570_v58 }
 0x6be   : > { %4790 = vmatpush3.bf16.msra.mxu1 %v6571_v1 }
 0x6bf   : > { %4792 = vmatprep.subr.bf16.mxu1 %v6572_v3 }
 0x6c2   : > { %4794 = vmatpush3.bf16.msra.mxu1 %v6573_v6 }
 0x6c3   : > { %4796 = vmatprep.subr.bf16.mxu1 %v6574_v8 }
 0x6c6   : > { %4798 = vmatpush3.bf16.msra.mxu1 %v6575_v10 }
 0x77c   : > { %v3373_v12 = vpop.f32.mrb[12].mxu1 }
 0x77d   : > { %v4803_v15 = vadd.f32 %v3373_v12, %v6576_v14  ;;  %v3375_v31 = vpop.f32.mrb[13].mxu1 }
 0x77e   : > { %v4804_v27 = vadd.f32 %v3375_v31, %v6576_v14 }
 0x77f   : > { %v3388_v60 = vmax.f32 %v4803_v15, 0.0 }
 0x780   : > { %v3389_v28 = vmax.f32 %v4804_v27, 0.0  ;;  %v3379_v33 = vpop.f32.mrb[14].mxu1 }
 0x781   : > { %v4805_v55 = vadd.f32 %v3379_v33, %v6577_v45  ;;  %v3381_v4 = vpop.f32.mrb[15].mxu1 }
 0x782   : > { %v4806_v9 = vadd.f32 %v3381_v4, %v6577_v45  ;;  %3488 = vmatprep.mubr.f32.mxu0 %v3389_v28  ;;  %3813 = vmatprep.mubr.f32.mxu1 %v3389_v28 }
 0x783   : > { %3489 = vmatmul.mubr.f32.vlgmr.msra.gmra.mrb[16].mxu0 %v3388_v60  ;;  %3814 = vmatmul.mubr.f32.vlgmr.msra.gmra.mrb[16].mxu1 %v3388_v60  ;;  %v3390_v40 = vmax.f32 %v4805_v55, 0.0 }
 0x784   : > { %v3391_v20 = vmax.f32 %v4806_v9, 0.0  ;;  %4706 = vmatpush3.bf16.msra.mxu0 %v6578_v35 }
 0x785   : > { %4708 = vmatprep.subr.bf16.mxu0 %v6579_v42 }
 0x786   : > { %3493 = vmatprep.mubr.f32.mxu0 %v3391_v20  ;;  %3818 = vmatprep.mubr.f32.mxu1 %v3391_v20 }
 0x787   : > { %3494 = vmatmul.mubr.f32.gmra.mrb[18].mxu0 %v3390_v40  ;;  %3819 = vmatmul.mubr.f32.gmra.mrb[18].mxu1 %v3390_v40 }
 0x788   : > { %4710 = vmatpush3.bf16.msra.mxu0 %v6580_v26  ;;  %3595 = vmatprep.mubr.f32.mxu0 %v3389_v28 }
 0x789   : > { %4712 = vmatprep.subr.bf16.mxu0 %v6581_v53 }
 0x78c   : > { %4714 = vmatpush3.bf16.msra.mxu0 %v6582_v59 }
 0x78d   : > { %4716 = vmatprep.subr.bf16.mxu0 %v6583_v48 }
 0x790   : > { %4718 = vmatpush3.bf16.msra.mxu0 %v6584_v21 }
 0x791   : > { %4720 = vmatprep.subr.bf16.mxu0 %v6585_v13 }
 0x794   : > { %4722 = vmatpush3.bf16.msra.mxu0 %v6586_v22 }
 0x795   : > { %4724 = vmatprep.subr.bf16.mxu0 %v6587_v43 }
 0x798   : > { %4726 = vmatpush3.bf16.msra.mxu0 %v6588_v11 }
 0x799   : > { %4728 = vmatprep.subr.bf16.mxu0 %v6589_v36 }
 0x79c   : > { %4730 = vmatpush3.bf16.msra.mxu0 %v6590_v24 }
 0x79d   : > { %4732 = vmatprep.subr.bf16.mxu0 %v6591_v38 }
 0x7a0   : > { %4734 = vmatpush3.bf16.msra.mxu0 %v6592_v34 }
 0x7a1   : > { %4736 = vmatprep.subr.bf16.mxu0 %v6593_v62 }
 0x7a3   : > { %3596 = vmatmul.mubr.f32.vlgmr.msra.gmra.mrb[20].mxu0 %v3388_v60 }
 0x7a4   : > { %3600 = vmatprep.mubr.f32.mxu0 %v3391_v20  ;;  %4738 = vmatpush3.bf16.msra.mxu0 %v6594_v50 }
 0x7a5   : > { %4740 = vmatprep.subr.bf16.mxu0 %v6595_v5 }
 0x7a7   : > { %3601 = vmatmul.mubr.f32.gmra.mrb[22].mxu0 %v3390_v40 }
 0x7a8   : > { %4742 = vmatpush3.bf16.msra.mxu0 %v6596_v2  ;;  %3704 = vmatprep.mubr.f32.mxu0 %v3389_v28 }
 0x7a9   : > { %4744 = vmatprep.subr.bf16.mxu0 %v6597_v16 }
 0x7ac   : > { %4746 = vmatpush3.bf16.msra.mxu0 %v6598_v25 }
 0x7ad   : > { %4748 = vmatprep.subr.bf16.mxu0 %v6599_v18 }
 0x7b0   : > { %4750 = vmatpush3.bf16.msra.mxu0 %v6600_v30 }
 0x7b1   : > { %4752 = vmatprep.subr.bf16.mxu0 %v6601_v19 }
 0x7b4   : > { %4754 = vmatpush3.bf16.msra.mxu0 %v6602_v29 }
 0x7b5   : > { %4756 = vmatprep.subr.bf16.mxu0 %v6603_v32 }
 0x7b8   : > { %4758 = vmatpush3.bf16.msra.mxu0 %v6604_v63 }
 0x7b9   : > { %4760 = vmatprep.subr.bf16.mxu0 %v6073_v49 }
 0x7bc   : > { %4762 = vmatpush3.bf16.msra.mxu0 %v6088_v37 }
 0x7bd   : > { %4764 = vmatprep.subr.bf16.mxu0 %v6091_v17 }
 0x7c0   : > { %4766 = vmatpush3.bf16.msra.mxu0 %v6101_v7 }
 0x7c3   : > { %3705 = vmatmul.mubr.f32.vlgmr.msra.gmra.mrb[24].mxu0 %v3388_v60 }
 0x7c4   : > { %3709 = vmatprep.mubr.f32.mxu0 %v3391_v20 }
 0x7c7   : > { %3710 = vmatmul.mubr.f32.gmra.mrb[26].mxu0 %v3390_v40 }
 0x856   : > { %v4423_v39 = vpop.f32.mrb[16].mxu0  ;;  %v4537_v46 = vpop.f32.mrb[16].mxu1 }
 0x857   : > { %v4424_v44 = vpop.f32.mrb[17].mxu0  ;;  %v4538_v41 = vpop.f32.mrb[17].mxu1 }
 0x858   : > { %v4425_v52 = vadd.f32 %v4424_v44, %v4423_v39  ;;  %v4539_v51 = vadd.f32 %v4538_v41, %v4537_v46 }
 0x85a   : > { %v4426_v0 = vpop.f32.mrb[18].mxu0  ;;  %v4540_v23 = vpop.f32.mrb[18].mxu1 }
 0x85b   : > { %v4427_v54 = vpop.f32.mrb[19].mxu0  ;;  %v4541_v57 = vpop.f32.mrb[19].mxu1 }
 0x85c   : > { %v4428_v49 = vadd.f32 %v4427_v54, %v4426_v0  ;;  %v4542_v56 = vadd.f32 %v4541_v57, %v4540_v23 }
 0x876   : > { %v4461_v37 = vpop.f32.mrb[20].mxu0 }
 0x877   : > { %v4462_v17 = vpop.f32.mrb[21].mxu0 }
 0x878   : > { %v4463_v7 = vadd.f32 %v4462_v17, %v4461_v37 }
 0x87a   : > { %v3606_v61 = vmax.f32 %v4425_v52, %v4463_v7  ;;  %v4464_v47 = vpop.f32.mrb[22].mxu0 }
 0x87b   : > { %v4465_v58 = vpop.f32.mrb[23].mxu0 }
 0x87c   : > { %v4466_v1 = vadd.f32 %v4465_v58, %v4464_v47 }
 0x87e   : > { %v3607_v3 = vmax.f32 %v4428_v49, %v4466_v1 }
 0x896   : > { %v4499_v6 = vpop.f32.mrb[24].mxu0 }
 0x897   : > { %v4500_v8 = vpop.f32.mrb[25].mxu0 }
 0x898   : > { %v4501_v10 = vadd.f32 %v4500_v8, %v4499_v6 }
 0x89a   : > { %v3715_v12 = vmax.f32 %v3606_v61, %v4501_v10  ;;  %v4502_v14 = vpop.f32.mrb[26].mxu0 }
 0x89b   : > { %v4503_v15 = vpop.f32.mrb[27].mxu0 }
 0x89c   : > { %v3824_v31 = vmax.f32 %v3715_v12, %v4539_v51  ;;  %v4504_v27 = vadd.f32 %v4503_v15, %v4502_v14 }
 0x89e   : > { %4226 = vst.msk [vmem:[%s6143_s13 + $0x10] sm:$0xff] %vm2204_vm15, %v3824_v31  ;;  %v3716_v28 = vmax.f32 %v3607_v3, %v4504_v27 }
 0x8a0   : > { %v3825_v33 = vmax.f32 %v3716_v28, %v4542_v56 }
 0x8a2   : > { %4227 = vst.msk [vmem:[%s6143_s13 + $0x18] sm:$0xff] %vm2204_vm15, %v3825_v33 }
 0x8a3   : > { %4997 = shalt.err (!%p4994_p3)
}
 0x8a4   : > { %s4998_s0 = scalar_lea.hbm %s6365_s7, 512  ;;  %s5002_s25 = scalar_lea.hbm %s6425_s11, 1024 }
 0x8a5   : > { %p4999_p4 = scmp.ne.s32.totalorder %s6365_s7, %s4998_s0  ;;  %p5003_p9 = scmp.lt.u32.totalorder %s6365_s7, %s6425_s11 }
 0x8a6   : > { %p5004_p10 = scmp.lt.u32.totalorder %s5002_s25, %s4998_s0  ;;  %p5006_p12 = scmp.lt.u32.totalorder %s4998_s0, %s6365_s7 }
 0x8a7   : > { %p5000_p7 = pnand %p4999_p4, %p5159_p5 }
 0x8a8   : > { %p5005_p11 = por %p5004_p10, %p5003_p9 }
 0x8a9   : > { %p5001_p8 = pneg %p5000_p7 }
 0x8aa   : > { %p5007_p13 = por %p5006_p12, %p5005_p11 }
 0x8ac   : > { %p5008_p0 = pnand %p5007_p13, %p5001_p8 }
 0x8ae   : > { %5011 = shalt.err (!%p5008_p0)
}
 0x8af   : > { %s5059_s5 = smov 128   ;;  %s5060_s24 = smov 8  }
 0x8b0   : > { %4875 = dma.vmem_to_hbm [thread:$0]  (%p5159_p5), %s6367_s15, 512, %s6365_s7, %s6373_s29, %s5059_s5, %s5059_s5, %s5060_s24  }
 0x8b1 PF: > { %p4881_p1 = scmp.ge.s32.totalorder %s5046_s20, 2  ;;  %s3859_s16 = sand.u32 1, %s5034_s17  }
 0x8b2   : > { %s3860_s21 = scalar_lea.sflag [#allocation4], %s3859_s16 }
 0x8b3   : > { %p4878_p2 = pnand %p4881_p1, %p5163_p6 }
 0x8b5   : > { %5029 = dma.done.wait (!%p4878_p2), %s3860_s21, 512  }
 0x8b6   : > { %5031 = vsyncadd (!%p4878_p2), %s3860_s21, 4294966784  ;;  %p21_p3 = scmp.ge.s32.totalorder %s5146_s23, 4   ;;  %s6605_s17 = smov %s5038_s18 }
 0x8b7   : > { %s6606_s18 = smov %s5042_s19  ;;  %s6607_s19 = smov %s5157_s26 }
 0x8b8   : > { %s6608_s20 = smov %s5146_s23  ;;  %23 = sbr.rel (!%p21_p3) target bundleno = 9 (0x9), region = 120 }
 0x8bf   :  { %3865 = vsyncpa [#allocation4], 1 }
 0x8c0   :  { %3867 = vsyncpa [#allocation4 + $0x1], 1 }

</bundles_post_ra>
